<compile_context>
chip_gen: v7x
topology: tpu7x:2x2x1
jax: 0.10.0
libtpu: 0.0.40
codegen_flags: <defaults>
</compile_context>

<pallas_src>
import math

import numpy as np
import jax
import jax.numpy as jnp
from jax import lax
from jax.experimental import pallas as pl
from jax.experimental.pallas import tpu as pltpu


# ----------------------------- in-kernel helpers -----------------------------

def _erf(x):
    # Abramowitz & Stegun 7.1.26 (max abs error ~1.5e-7); the divide is replaced
    # by an EUP approximate reciprocal (free slot in a VPU/MXU-bound bundle).
    a1, a2, a3, a4, a5 = 0.254829592, -0.284496736, 1.421413741, -1.453152027, 1.061405429
    p = 0.3275911
    s = jnp.where(x >= 0.0, 1.0, -1.0)
    ax = jnp.abs(x)
    t = pl.reciprocal(1.0 + p * ax, approx=True)
    poly = ((((a5 * t + a4) * t + a3) * t + a2) * t + a1) * t
    return s * (1.0 - poly * jnp.exp(-ax * ax))


def _gelu(x):
    # exact GELU: x * 0.5 * (1 + erf(x / sqrt(2)))  (matches F.gelu default)
    return 0.5 * x * (1.0 + _erf(x * 0.7071067811865476))


# --------------------------------- the kernel --------------------------------

def _box_mlp_kernel(x_ref, xo_ref, mask_ref,            # (Bblk, C*H*W) f32
                    et_ref, e_ref,                      # (C*H*W, C) / (C, C*H*W) f32 0/1
                    m1_ref, bc1_ref,                    # (C*H*W, C*H1*W1) bf16 / (1, C*H1*W1) f32
                    m2_ref, bc2_ref,                    # (C*H1*W1, C*H2*W2) bf16 / (1, C*H2*W2) f32
                    w1c_ref, w1v_ref, b1_ref,           # dense1 split weights + bias
                    w2_ref, b2_ref, w3_ref, b3_ref,     # dense2 / dense3
                    out_ref):                           # (Bblk, num_outputs) f32
    f32 = jnp.float32
    bf16 = jnp.bfloat16

    xo = xo_ref[...]          # (Bblk, C*H*W)
    msk = mask_ref[...]       # 0/1 box mask, tiled over channels
    et = et_ref[...]          # (C*H*W, C) channel-pooling 0/1 matrix

    # ---- masked per-channel mean / unbiased variance (single pass over xo) ----
    masked = xo * msk
    s1 = jnp.dot(masked, et, preferred_element_type=f32)          # sum(x)   per (b, c)
    s2 = jnp.dot(masked * xo, et, preferred_element_type=f32)     # sum(x^2) per (b, c)
    n = jnp.dot(msk, et, preferred_element_type=f32)              # box pixel count (per column)
    mean = s1 / n                                                 # (Bblk, C)
    var = (s2 - s1 * mean) / (n - 1.0)                            # (Bblk, C), ddof=1

    # ---- x = x - mean (broadcast back over (c, h, w) lanes via a 0/1 matmul) ----
    mean_map = jnp.dot(mean, e_ref[...], preferred_element_type=f32)   # (Bblk, C*H*W)
    xc = (x_ref[...] - mean_map).astype(bf16)

    # ---- two stride-2 3x3 convs, each folded into a single dense matmul ----
    h1 = jnp.dot(xc, m1_ref[...], preferred_element_type=f32) + bc1_ref[...]
    h2 = jnp.dot(h1.astype(bf16), m2_ref[...], preferred_element_type=f32) + bc2_ref[...]

    # ---- MLP head: dense1 on concat([conv_flat, var]) without materializing the concat ----
    d1 = (jnp.dot(h2.astype(bf16), w1c_ref[...], preferred_element_type=f32)
          + jnp.dot(var.astype(bf16), w1v_ref[...], preferred_element_type=f32)
          + b1_ref[...])
    a1 = _gelu(d1)
    d2 = jnp.dot(a1.astype(bf16), w2_ref[...], preferred_element_type=f32) + b2_ref[...]
    a2 = _gelu(d2)
    logits = jnp.dot(a2.astype(bf16), w3_ref[...], preferred_element_type=f32) + b3_ref[...]
    out_ref[...] = jax.nn.sigmoid(logits)


# ------------------------------ wrapper / glue --------------------------------

def boxes_to_indices(objbox, h, w):
    """Normalized [x1, y1, x2, y2] boxes -> int feature-map indices [r0, r1, c0, c1).
    Clamped so every patch is at least 2x2 (unbiased var well-defined)."""
    x1, y1, x2, y2 = objbox[:, 0], objbox[:, 1], objbox[:, 2], objbox[:, 3]
    c0 = jnp.clip(jnp.floor(x1 * w), 0, w - 2).astype(jnp.int32)
    r0 = jnp.clip(jnp.floor(y1 * h), 0, h - 2).astype(jnp.int32)
    c1 = jnp.clip(jnp.ceil(x2 * w).astype(jnp.int32), c0 + 2, w)
    r1 = jnp.clip(jnp.ceil(y2 * h).astype(jnp.int32), r0 + 2, h)
    return jnp.stack([r0, r1, c0, c1], axis=1).astype(jnp.int32)


def build_box_mask(box_idx, h, w):
    """(B, 4) int indices -> (B, H, W) float 0/1 mask."""
    r0 = box_idx[:, 0][:, None, None]
    r1 = box_idx[:, 1][:, None, None]
    c0 = box_idx[:, 2][:, None, None]
    c1 = box_idx[:, 3][:, None, None]
    rows = jnp.arange(h)[None, :, None]
    cols = jnp.arange(w)[None, None, :]
    m = (rows >= r0) & (rows < r1) & (cols >= c0) & (cols < c1)
    return m.astype(jnp.float32)


def _unfold_conv3x3_s2_p1(wt, hin, win):
    """Dense matrix M (Cin*Hin*Win, Cout*Hout*Wout) such that, per sample,
    flatten(conv2d(x, wt, stride=2, pad=1)) == flatten(x) @ M  (NCHW flatten).
    Weight-only preprocessing done once in the wrapper (host side)."""
    wt = np.asarray(wt, np.float32)                     # (Cout, Cin, 3, 3)
    cout, cin, kh, kw = wt.shape
    hout = (hin - kh + 2) // 2 + 1
    wout = (win - kw + 2) // 2 + 1
    m = np.zeros((cin, hin, win, cout, hout, wout), np.float32)
    for i in range(hout):
        for ky in range(kh):
            hh = 2 * i + ky - 1
            if hh < 0 or hh >= hin:
                continue
            for j in range(wout):
                for kx in range(kw):
                    ww = 2 * j + kx - 1
                    if ww < 0 or ww >= win:
                        continue
                    m[:, hh, ww, :, i, j] = wt[:, :, ky, kx].T
    return jnp.asarray(m.reshape(cin * hin * win, cout * hout * wout))


def box_mlp_forward(x, x_obj, objbox, params, num_outputs=4, batch_block=8):
    b, c, h, w = x.shape
    h1 = (h - 3 + 2) // 2 + 1
    w1 = (w - 3 + 2) // 2 + 1
    h2 = (h1 - 3 + 2) // 2 + 1
    w2 = (w1 - 3 + 2) // 2 + 1
    nout = num_outputs
    chw = c * h * w
    f1 = c * h1 * w1
    f2 = c * h2 * w2

    # ---- box mask (built in the wrapper; no SMEM scalar-prefetch table) ----
    box_idx = boxes_to_indices(objbox, h, w)
    bm = build_box_mask(box_idx, h, w)                                      # (B, H, W)
    maskfull = jnp.broadcast_to(bm[:, None, :, :], (b, c, h, w)).reshape(b, chw)

    # ---- lane-dense row-per-sample activations ----
    x_row = x.reshape(b, chw).astype(jnp.float32)
    xo_row = x_obj.reshape(b, chw).astype(jnp.float32)

    # ---- pad the batch to a multiple of the batch block ----
    bblk = min(b, batch_block)
    nblk = int(pl.cdiv(b, bblk))
    bp = nblk * bblk
    if bp != b:
        pad = bp - b
        x_row = jnp.pad(x_row, ((0, pad), (0, 0)))
        xo_row = jnp.pad(xo_row, ((0, pad), (0, 0)))
        maskfull = jnp.pad(maskfull, ((0, pad), (0, 0)), constant_values=1.0)

    # ---- weight preprocessing (data independent) ----
    m1 = _unfold_conv3x3_s2_p1(params['conv1_w'], h, w).astype(jnp.bfloat16)    # (chw, f1)
    m2 = _unfold_conv3x3_s2_p1(params['conv2_w'], h1, w1).astype(jnp.bfloat16)  # (f1, f2)
    bc1_row = jnp.repeat(params['conv1_b'], h1 * w1)[None, :].astype(jnp.float32)
    bc2_row = jnp.repeat(params['conv2_b'], h2 * w2)[None, :].astype(jnp.float32)

    e_np = np.kron(np.eye(c, dtype=np.float32), np.ones((1, h * w), np.float32))  # (c, chw)
    e_mat = jnp.asarray(e_np)                 # channel -> (c,h,w) broadcast matrix
    et_mat = jnp.asarray(e_np.T)              # (c,h,w) -> channel pooling matrix

    wd1c = params['dense1_w'][:, :f2].T.astype(jnp.bfloat16)   # (f2, c)   conv-feature part
    wd1v = params['dense1_w'][:, f2:].T.astype(jnp.bfloat16)   # (c, c)    variance part
    bd1 = params['dense1_b'][None, :].astype(jnp.float32)
    wd2 = params['dense2_w'].T.astype(jnp.bfloat16)
    bd2 = params['dense2_b'][None, :].astype(jnp.float32)
    wd3 = params['dense3_w'].T.astype(jnp.bfloat16)            # (c, nout)
    bd3 = params['dense3_b'][None, :].astype(jnp.float32)

    bmap = lambda i: (i, 0)
    cmap = lambda i: (0, 0)
    grid_spec = pltpu.PrefetchScalarGridSpec(
        num_scalar_prefetch=0,
        grid=(nblk,),
        in_specs=[
            pl.BlockSpec((bblk, chw), bmap),        # x
            pl.BlockSpec((bblk, chw), bmap),        # x_obj
            pl.BlockSpec((bblk, chw), bmap),        # box mask (tiled over channels)
            pl.BlockSpec((chw, c), cmap),           # ET (channel pooling)
            pl.BlockSpec((c, chw), cmap),           # E  (channel broadcast)
            pl.BlockSpec((chw, f1), cmap),          # conv1 unfolded weights
            pl.BlockSpec((1, f1), cmap),            # conv1 bias row
            pl.BlockSpec((f1, f2), cmap),           # conv2 unfolded weights
            pl.BlockSpec((1, f2), cmap),            # conv2 bias row
            pl.BlockSpec((f2, c), cmap),            # dense1 w (conv part)
            pl.BlockSpec((c, c), cmap),             # dense1 w (var part)
            pl.BlockSpec((1, c), cmap),             # dense1 b
            pl.BlockSpec((c, c), cmap),             # dense2 w
            pl.BlockSpec((1, c), cmap),             # dense2 b
            pl.BlockSpec((c, nout), cmap),          # dense3 w
            pl.BlockSpec((1, nout), cmap),          # dense3 b
        ],
        out_specs=pl.BlockSpec((bblk, nout), bmap),
    )

    out = pl.pallas_call(
        _box_mlp_kernel,
        out_shape=jax.ShapeDtypeStruct((bp, nout), jnp.float32),
        grid_spec=grid_spec,
        compiler_params=pltpu.CompilerParams(dimension_semantics=("parallel",)),
    )(x_row, xo_row, maskfull, et_mat, e_mat, m1, bc1_row, m2, bc2_row,
      wd1c, wd1v, bd1, wd2, bd2, wd3, bd3)
    return out[:b]


# ------------------------- params & plain-JAX reference ----------------------

def make_params(key, c, h, w, num_outputs=4):
    ks = 3
    h1 = (h - ks + 2) // 2 + 1
    w1 = (w - ks + 2) // 2 + 1
    h2 = (h1 - ks + 2) // 2 + 1
    w2 = (w1 - ks + 2) // 2 + 1
    lin_in = c * h2 * w2 + c
    keys = jax.random.split(key, 10)

    def u(k, shape, fan_in):
        bound = 1.0 / math.sqrt(fan_in)
        return jax.random.uniform(k, shape, jnp.float32, -bound, bound)

    return {
        'conv1_w': u(keys[0], (c, c, ks, ks), c * ks * ks),
        'conv1_b': u(keys[1], (c,), c * ks * ks),
        'conv2_w': u(keys[2], (c, c, ks, ks), c * ks * ks),
        'conv2_b': u(keys[3], (c,), c * ks * ks),
        'dense1_w': u(keys[4], (c, lin_in), lin_in),
        'dense1_b': u(keys[5], (c,), lin_in),
        'dense2_w': u(keys[6], (c, c), c),
        'dense2_b': u(keys[7], (c,), c),
        'dense3_w': u(keys[8], (num_outputs, c), c),
        'dense3_b': u(keys[9], (num_outputs,), c),
    }


def reference_forward(x, x_obj, box_idx, params):
    b = x.shape[0]
    bi = jax.device_get(box_idx)
    means, vars_ = [], []
    for i in range(b):
        r0, r1, c0, c1 = [int(v) for v in bi[i]]
        patch = x_obj[i, :, r0:r1, c0:c1]
        means.append(patch.mean(axis=(1, 2)))
        vars_.append(patch.var(axis=(1, 2), ddof=1))
    mean = jnp.stack(means)
    var = jnp.stack(vars_)
    xc = x - mean[:, :, None, None]
    dn = ('NCHW', 'OIHW', 'NCHW')
    y = lax.conv_general_dilated(xc, params['conv1_w'], (2, 2), [(1, 1), (1, 1)],
                                 dimension_numbers=dn, precision=lax.Precision.HIGHEST)
    y = y + params['conv1_b'][None, :, None, None]
    y = lax.conv_general_dilated(y, params['conv2_w'], (2, 2), [(1, 1), (1, 1)],
                                 dimension_numbers=dn, precision=lax.Precision.HIGHEST)
    y = y + params['conv2_b'][None, :, None, None]
    feat = jnp.concatenate([y.reshape(b, -1), var], axis=1)
    hp = lax.Precision.HIGHEST
    a1 = jax.nn.gelu(jnp.dot(feat, params['dense1_w'].T, precision=hp) + params['dense1_b'],
                     approximate=False)
    a2 = jax.nn.gelu(jnp.dot(a1, params['dense2_w'].T, precision=hp) + params['dense2_b'],
                     approximate=False)
    logits = jnp.dot(a2, params['dense3_w'].T, precision=hp) + params['dense3_b']
    return jax.nn.sigmoid(logits)


# ----------------------------------- main -------------------------------------

if __name__ == "__main__":
    B, C, H, W = 2, 4, 16, 16
    NOUT = 4

    key = jax.random.PRNGKey(0)
    kp, kx, ko, kb1, kb2 = jax.random.split(key, 5)
    params = make_params(kp, C, H, W, NOUT)

    x = jax.random.normal(kx, (B, C, H, W), jnp.float32)
    x_obj = jax.random.normal(ko, (B, C, H, W), jnp.float32)
    lo = jax.random.uniform(kb1, (B, 2), jnp.float32, 0.05, 0.4)
    hi = lo + jax.random.uniform(kb2, (B, 2), jnp.float32, 0.3, 0.5)
    objbox = jnp.concatenate([lo, hi], axis=1)          # normalized [x1, y1, x2, y2]

    out = box_mlp_forward(x, x_obj, objbox, params, NOUT)
    out = jax.block_until_ready(out)
    assert out.shape == (B, NOUT), out.shape

    ref = reference_forward(x, x_obj, boxes_to_indices(objbox, H, W), params)
    ref = jax.block_until_ready(ref)
    # bf16 MXU operands + approx-reciprocal erf -> typical error ~1e-3 vs f32 reference.
    err = float(jnp.max(jnp.abs(out - ref)))
    assert err < 2e-2, (err, out, ref)

    print("KERNEL_OK")
</pallas_src>

<mosaic_0001>
module attributes {stable_mosaic.version = 11 : i64} {
  func.func @_box_mlp_kernel(%arg0: i32, %arg1: memref<2x1024xf32, #tpu.memory_space<vmem>>, %arg2: memref<2x1024xf32, #tpu.memory_space<vmem>>, %arg3: memref<2x1024xf32, #tpu.memory_space<vmem>>, %arg4: memref<1024x4xf32, #tpu.memory_space<vmem>>, %arg5: memref<4x1024xf32, #tpu.memory_space<vmem>>, %arg6: memref<1024x256xbf16, #tpu.memory_space<vmem>>, %arg7: memref<1x256xf32, #tpu.memory_space<vmem>>, %arg8: memref<256x64xbf16, #tpu.memory_space<vmem>>, %arg9: memref<1x64xf32, #tpu.memory_space<vmem>>, %arg10: memref<64x4xbf16, #tpu.memory_space<vmem>>, %arg11: memref<4x4xbf16, #tpu.memory_space<vmem>>, %arg12: memref<1x4xf32, #tpu.memory_space<vmem>>, %arg13: memref<4x4xbf16, #tpu.memory_space<vmem>>, %arg14: memref<1x4xf32, #tpu.memory_space<vmem>>, %arg15: memref<4x4xbf16, #tpu.memory_space<vmem>>, %arg16: memref<1x4xf32, #tpu.memory_space<vmem>>, %arg17: memref<2x4xf32, #tpu.memory_space<vmem>>) attributes {dimension_semantics = [#tpu.dimension_semantics<parallel>], iteration_bounds = array<i64: 1>, scalar_prefetch = 0 : i64, scratch_operands = 0 : i64, tpu.core_type = #tpu.core_type<tc>, window_params = [{transform_indices = @transform_0, window_bounds = array<i64: 2, 1024>}, {transform_indices = @transform_1, window_bounds = array<i64: 2, 1024>}, {transform_indices = @transform_2, window_bounds = array<i64: 2, 1024>}, {pipeline_mode = #tpu.pipeline_mode<synchronous>, transform_indices = @transform_3, window_bounds = array<i64: 1024, 4>}, {pipeline_mode = #tpu.pipeline_mode<synchronous>, transform_indices = @transform_4, window_bounds = array<i64: 4, 1024>}, {pipeline_mode = #tpu.pipeline_mode<synchronous>, transform_indices = @transform_5, window_bounds = array<i64: 1024, 256>}, {pipeline_mode = #tpu.pipeline_mode<synchronous>, transform_indices = @transform_6, window_bounds = array<i64: 1, 256>}, {pipeline_mode = #tpu.pipeline_mode<synchronous>, transform_indices = @transform_7, window_bounds = array<i64: 256, 64>}, {pipeline_mode = #tpu.pipeline_mode<synchronous>, transform_indices = @transform_8, window_bounds = array<i64: 1, 64>}, {pipeline_mode = #tpu.pipeline_mode<synchronous>, transform_indices = @transform_9, window_bounds = array<i64: 64, 4>}, {pipeline_mode = #tpu.pipeline_mode<synchronous>, transform_indices = @transform_10, window_bounds = array<i64: 4, 4>}, {pipeline_mode = #tpu.pipeline_mode<synchronous>, transform_indices = @transform_11, window_bounds = array<i64: 1, 4>}, {pipeline_mode = #tpu.pipeline_mode<synchronous>, transform_indices = @transform_12, window_bounds = array<i64: 4, 4>}, {pipeline_mode = #tpu.pipeline_mode<synchronous>, transform_indices = @transform_13, window_bounds = array<i64: 1, 4>}, {pipeline_mode = #tpu.pipeline_mode<synchronous>, transform_indices = @transform_14, window_bounds = array<i64: 4, 4>}, {pipeline_mode = #tpu.pipeline_mode<synchronous>, transform_indices = @transform_15, window_bounds = array<i64: 1, 4>}, {transform_indices = @transform_16, window_bounds = array<i64: 2, 4>}]} {
    %c0 = arith.constant 0 : index
    %c0_0 = arith.constant 0 : index
    %0 = vector.load %arg2[%c0, %c0_0] : memref<2x1024xf32, #tpu.memory_space<vmem>>, vector<2x1024xf32>
    %c0_1 = arith.constant 0 : index
    %c0_2 = arith.constant 0 : index
    %1 = vector.load %arg3[%c0_1, %c0_2] : memref<2x1024xf32, #tpu.memory_space<vmem>>, vector<2x1024xf32>
    %c0_3 = arith.constant 0 : index
    %c0_4 = arith.constant 0 : index
    %2 = vector.load %arg4[%c0_3, %c0_4] : memref<1024x4xf32, #tpu.memory_space<vmem>>, vector<1024x4xf32>
    %3 = arith.mulf %0, %1 : vector<2x1024xf32>
    %cst = arith.constant dense<0.000000e+00> : vector<2x4xf32>
    %4 = tpu.matmul %3, %2, %cst {dimension_numbers = #tpu.dot_dimension_numbers<[1], [0], [0], [1], [0, 0, 1, 1], [], []>} : vector<2x1024xf32>, vector<1024x4xf32>, vector<2x4xf32> -> vector<2x4xf32>
    %5 = arith.mulf %3, %0 : vector<2x1024xf32>
    %cst_5 = arith.constant dense<0.000000e+00> : vector<2x4xf32>
    %6 = tpu.matmul %5, %2, %cst_5 {dimension_numbers = #tpu.dot_dimension_numbers<[1], [0], [0], [1], [0, 0, 1, 1], [], []>} : vector<2x1024xf32>, vector<1024x4xf32>, vector<2x4xf32> -> vector<2x4xf32>
    %cst_6 = arith.constant dense<0.000000e+00> : vector<2x4xf32>
    %7 = tpu.matmul %1, %2, %cst_6 {dimension_numbers = #tpu.dot_dimension_numbers<[1], [0], [0], [1], [0, 0, 1, 1], [], []>} : vector<2x1024xf32>, vector<1024x4xf32>, vector<2x4xf32> -> vector<2x4xf32>
    %8 = arith.divf %4, %7 : vector<2x4xf32>
    %9 = arith.mulf %4, %8 : vector<2x4xf32>
    %10 = arith.subf %6, %9 : vector<2x4xf32>
    %cst_7 = arith.constant 1.000000e+00 : f32
    %11 = vector.broadcast %cst_7 : f32 to vector<2x4xf32>
    %12 = arith.subf %7, %11 : vector<2x4xf32>
    %13 = arith.divf %10, %12 : vector<2x4xf32>
    %c0_8 = arith.constant 0 : index
    %c0_9 = arith.constant 0 : index
    %14 = vector.load %arg5[%c0_8, %c0_9] : memref<4x1024xf32, #tpu.memory_space<vmem>>, vector<4x1024xf32>
    %cst_10 = arith.constant dense<0.000000e+00> : vector<2x1024xf32>
    %15 = tpu.matmul %8, %14, %cst_10 {dimension_numbers = #tpu.dot_dimension_numbers<[1], [0], [0], [1], [0, 0, 1, 1], [], []>} : vector<2x4xf32>, vector<4x1024xf32>, vector<2x1024xf32> -> vector<2x1024xf32>
    %c0_11 = arith.constant 0 : index
    %c0_12 = arith.constant 0 : index
    %16 = vector.load %arg1[%c0_11, %c0_12] : memref<2x1024xf32, #tpu.memory_space<vmem>>, vector<2x1024xf32>
    %17 = arith.subf %16, %15 : vector<2x1024xf32>
    %18 = arith.truncf %17 : vector<2x1024xf32> to vector<2x1024xbf16>
    %c0_13 = arith.constant 0 : index
    %c0_14 = arith.constant 0 : index
    %19 = vector.load %arg6[%c0_13, %c0_14] : memref<1024x256xbf16, #tpu.memory_space<vmem>>, vector<1024x256xbf16>
    %cst_15 = arith.constant dense<0.000000e+00> : vector<2x256xf32>
    %20 = tpu.matmul %18, %19, %cst_15 {dimension_numbers = #tpu.dot_dimension_numbers<[1], [0], [0], [1], [0, 0, 1, 1], [], []>} : vector<2x1024xbf16>, vector<1024x256xbf16>, vector<2x256xf32> -> vector<2x256xf32>
    %c0_16 = arith.constant 0 : index
    %c0_17 = arith.constant 0 : index
    %21 = vector.load %arg7[%c0_16, %c0_17] : memref<1x256xf32, #tpu.memory_space<vmem>>, vector<1x256xf32>
    %22 = vector.broadcast %21 : vector<1x256xf32> to vector<2x256xf32>
    %23 = arith.addf %20, %22 : vector<2x256xf32>
    %24 = arith.truncf %23 : vector<2x256xf32> to vector<2x256xbf16>
    %c0_18 = arith.constant 0 : index
    %c0_19 = arith.constant 0 : index
    %25 = vector.load %arg8[%c0_18, %c0_19] : memref<256x64xbf16, #tpu.memory_space<vmem>>, vector<256x64xbf16>
    %cst_20 = arith.constant dense<0.000000e+00> : vector<2x64xf32>
    %26 = tpu.matmul %24, %25, %cst_20 {dimension_numbers = #tpu.dot_dimension_numbers<[1], [0], [0], [1], [0, 0, 1, 1], [], []>} : vector<2x256xbf16>, vector<256x64xbf16>, vector<2x64xf32> -> vector<2x64xf32>
    %c0_21 = arith.constant 0 : index
    %c0_22 = arith.constant 0 : index
    %27 = vector.load %arg9[%c0_21, %c0_22] : memref<1x64xf32, #tpu.memory_space<vmem>>, vector<1x64xf32>
    %28 = vector.broadcast %27 : vector<1x64xf32> to vector<2x64xf32>
    %29 = arith.addf %26, %28 : vector<2x64xf32>
    %30 = arith.truncf %29 : vector<2x64xf32> to vector<2x64xbf16>
    %c0_23 = arith.constant 0 : index
    %c0_24 = arith.constant 0 : index
    %31 = vector.load %arg10[%c0_23, %c0_24] : memref<64x4xbf16, #tpu.memory_space<vmem>>, vector<64x4xbf16>
    %cst_25 = arith.constant dense<0.000000e+00> : vector<2x4xf32>
    %32 = tpu.matmul %30, %31, %cst_25 {dimension_numbers = #tpu.dot_dimension_numbers<[1], [0], [0], [1], [0, 0, 1, 1], [], []>} : vector<2x64xbf16>, vector<64x4xbf16>, vector<2x4xf32> -> vector<2x4xf32>
    %33 = arith.truncf %13 : vector<2x4xf32> to vector<2x4xbf16>
    %c0_26 = arith.constant 0 : index
    %c0_27 = arith.constant 0 : index
    %34 = vector.load %arg11[%c0_26, %c0_27] : memref<4x4xbf16, #tpu.memory_space<vmem>>, vector<4x4xbf16>
    %cst_28 = arith.constant dense<0.000000e+00> : vector<2x4xf32>
    %35 = tpu.matmul %33, %34, %cst_28 {dimension_numbers = #tpu.dot_dimension_numbers<[1], [0], [0], [1], [0, 0, 1, 1], [], []>} : vector<2x4xbf16>, vector<4x4xbf16>, vector<2x4xf32> -> vector<2x4xf32>
    %36 = arith.addf %32, %35 : vector<2x4xf32>
    %c0_29 = arith.constant 0 : index
    %c0_30 = arith.constant 0 : index
    %37 = vector.load %arg12[%c0_29, %c0_30] : memref<1x4xf32, #tpu.memory_space<vmem>>, vector<1x4xf32>
    %38 = vector.broadcast %37 : vector<1x4xf32> to vector<2x4xf32>
    %39 = arith.addf %36, %38 : vector<2x4xf32>
    %cst_31 = arith.constant 5.000000e-01 : f32
    %40 = vector.broadcast %cst_31 : f32 to vector<2x4xf32>
    %41 = arith.mulf %40, %39 : vector<2x4xf32>
    %cst_32 = arith.constant 0.707106769 : f32
    %42 = vector.broadcast %cst_32 : f32 to vector<2x4xf32>
    %43 = arith.mulf %39, %42 : vector<2x4xf32>
    %cst_33 = arith.constant 0.000000e+00 : f32
    %44 = vector.broadcast %cst_33 : f32 to vector<2x4xf32>
    %45 = arith.cmpf oge, %43, %44 : vector<2x4xf32>
    %cst_34 = arith.constant 1.000000e+00 : f32
    %cst_35 = arith.constant -1.000000e+00 : f32
    %46 = vector.broadcast %cst_34 : f32 to vector<2x4xf32>
    %47 = vector.broadcast %cst_35 : f32 to vector<2x4xf32>
    %48 = arith.select %45, %46, %47 : vector<2x4xi1>, vector<2x4xf32>
    %49 = math.absf %43 : vector<2x4xf32>
    %cst_36 = arith.constant 0.327591091 : f32
    %50 = vector.broadcast %cst_36 : f32 to vector<2x4xf32>
    %51 = arith.mulf %50, %49 : vector<2x4xf32>
    %cst_37 = arith.constant 1.000000e+00 : f32
    %52 = vector.broadcast %cst_37 : f32 to vector<2x4xf32>
    %53 = arith.addf %52, %51 : vector<2x4xf32>
    %54 = tpu.reciprocal %53 {approx = true} : vector<2x4xf32> -> vector<2x4xf32>
    %cst_38 = arith.constant 1.06140542 : f32
    %55 = vector.broadcast %cst_38 : f32 to vector<2x4xf32>
    %56 = arith.mulf %55, %54 : vector<2x4xf32>
    %cst_39 = arith.constant -1.45315206 : f32
    %57 = vector.broadcast %cst_39 : f32 to vector<2x4xf32>
    %58 = arith.addf %56, %57 : vector<2x4xf32>
    %59 = arith.mulf %58, %54 : vector<2x4xf32>
    %cst_40 = arith.constant 1.42141378 : f32
    %60 = vector.broadcast %cst_40 : f32 to vector<2x4xf32>
    %61 = arith.addf %59, %60 : vector<2x4xf32>
    %62 = arith.mulf %61, %54 : vector<2x4xf32>
    %cst_41 = arith.constant -0.284496725 : f32
    %63 = vector.broadcast %cst_41 : f32 to vector<2x4xf32>
    %64 = arith.addf %62, %63 : vector<2x4xf32>
    %65 = arith.mulf %64, %54 : vector<2x4xf32>
    %cst_42 = arith.constant 0.254829586 : f32
    %66 = vector.broadcast %cst_42 : f32 to vector<2x4xf32>
    %67 = arith.addf %65, %66 : vector<2x4xf32>
    %68 = arith.mulf %67, %54 : vector<2x4xf32>
    %cst_43 = arith.constant 0.000000e+00 : f32
    %69 = vector.broadcast %cst_43 : f32 to vector<2x4xf32>
    %70 = arith.subf %69, %49 : vector<2x4xf32>
    %71 = arith.mulf %70, %49 : vector<2x4xf32>
    %72 = math.exp %71 : vector<2x4xf32>
    %73 = arith.mulf %68, %72 : vector<2x4xf32>
    %cst_44 = arith.constant 1.000000e+00 : f32
    %74 = vector.broadcast %cst_44 : f32 to vector<2x4xf32>
    %75 = arith.subf %74, %73 : vector<2x4xf32>
    %76 = arith.mulf %48, %75 : vector<2x4xf32>
    %cst_45 = arith.constant 1.000000e+00 : f32
    %77 = vector.broadcast %cst_45 : f32 to vector<2x4xf32>
    %78 = arith.addf %77, %76 : vector<2x4xf32>
    %79 = arith.mulf %41, %78 : vector<2x4xf32>
    %80 = arith.truncf %79 : vector<2x4xf32> to vector<2x4xbf16>
    %c0_46 = arith.constant 0 : index
    %c0_47 = arith.constant 0 : index
    %81 = vector.load %arg13[%c0_46, %c0_47] : memref<4x4xbf16, #tpu.memory_space<vmem>>, vector<4x4xbf16>
    %cst_48 = arith.constant dense<0.000000e+00> : vector<2x4xf32>
    %82 = tpu.matmul %80, %81, %cst_48 {dimension_numbers = #tpu.dot_dimension_numbers<[1], [0], [0], [1], [0, 0, 1, 1], [], []>} : vector<2x4xbf16>, vector<4x4xbf16>, vector<2x4xf32> -> vector<2x4xf32>
    %c0_49 = arith.constant 0 : index
    %c0_50 = arith.constant 0 : index
    %83 = vector.load %arg14[%c0_49, %c0_50] : memref<1x4xf32, #tpu.memory_space<vmem>>, vector<1x4xf32>
    %84 = vector.broadcast %83 : vector<1x4xf32> to vector<2x4xf32>
    %85 = arith.addf %82, %84 : vector<2x4xf32>
    %cst_51 = arith.constant 5.000000e-01 : f32
    %86 = vector.broadcast %cst_51 : f32 to vector<2x4xf32>
    %87 = arith.mulf %86, %85 : vector<2x4xf32>
    %cst_52 = arith.constant 0.707106769 : f32
    %88 = vector.broadcast %cst_52 : f32 to vector<2x4xf32>
    %89 = arith.mulf %85, %88 : vector<2x4xf32>
    %cst_53 = arith.constant 0.000000e+00 : f32
    %90 = vector.broadcast %cst_53 : f32 to vector<2x4xf32>
    %91 = arith.cmpf oge, %89, %90 : vector<2x4xf32>
    %cst_54 = arith.constant 1.000000e+00 : f32
    %cst_55 = arith.constant -1.000000e+00 : f32
    %92 = vector.broadcast %cst_54 : f32 to vector<2x4xf32>
    %93 = vector.broadcast %cst_55 : f32 to vector<2x4xf32>
    %94 = arith.select %91, %92, %93 : vector<2x4xi1>, vector<2x4xf32>
    %95 = math.absf %89 : vector<2x4xf32>
    %cst_56 = arith.constant 0.327591091 : f32
    %96 = vector.broadcast %cst_56 : f32 to vector<2x4xf32>
    %97 = arith.mulf %96, %95 : vector<2x4xf32>
    %cst_57 = arith.constant 1.000000e+00 : f32
    %98 = vector.broadcast %cst_57 : f32 to vector<2x4xf32>
    %99 = arith.addf %98, %97 : vector<2x4xf32>
    %100 = tpu.reciprocal %99 {approx = true} : vector<2x4xf32> -> vector<2x4xf32>
    %cst_58 = arith.constant 1.06140542 : f32
    %101 = vector.broadcast %cst_58 : f32 to vector<2x4xf32>
    %102 = arith.mulf %101, %100 : vector<2x4xf32>
    %cst_59 = arith.constant -1.45315206 : f32
    %103 = vector.broadcast %cst_59 : f32 to vector<2x4xf32>
    %104 = arith.addf %102, %103 : vector<2x4xf32>
    %105 = arith.mulf %104, %100 : vector<2x4xf32>
    %cst_60 = arith.constant 1.42141378 : f32
    %106 = vector.broadcast %cst_60 : f32 to vector<2x4xf32>
    %107 = arith.addf %105, %106 : vector<2x4xf32>
    %108 = arith.mulf %107, %100 : vector<2x4xf32>
    %cst_61 = arith.constant -0.284496725 : f32
    %109 = vector.broadcast %cst_61 : f32 to vector<2x4xf32>
    %110 = arith.addf %108, %109 : vector<2x4xf32>
    %111 = arith.mulf %110, %100 : vector<2x4xf32>
    %cst_62 = arith.constant 0.254829586 : f32
    %112 = vector.broadcast %cst_62 : f32 to vector<2x4xf32>
    %113 = arith.addf %111, %112 : vector<2x4xf32>
    %114 = arith.mulf %113, %100 : vector<2x4xf32>
    %cst_63 = arith.constant 0.000000e+00 : f32
    %115 = vector.broadcast %cst_63 : f32 to vector<2x4xf32>
    %116 = arith.subf %115, %95 : vector<2x4xf32>
    %117 = arith.mulf %116, %95 : vector<2x4xf32>
    %118 = math.exp %117 : vector<2x4xf32>
    %119 = arith.mulf %114, %118 : vector<2x4xf32>
    %cst_64 = arith.constant 1.000000e+00 : f32
    %120 = vector.broadcast %cst_64 : f32 to vector<2x4xf32>
    %121 = arith.subf %120, %119 : vector<2x4xf32>
    %122 = arith.mulf %94, %121 : vector<2x4xf32>
    %cst_65 = arith.constant 1.000000e+00 : f32
    %123 = vector.broadcast %cst_65 : f32 to vector<2x4xf32>
    %124 = arith.addf %123, %122 : vector<2x4xf32>
    %125 = arith.mulf %87, %124 : vector<2x4xf32>
    %126 = arith.truncf %125 : vector<2x4xf32> to vector<2x4xbf16>
    %c0_66 = arith.constant 0 : index
    %c0_67 = arith.constant 0 : index
    %127 = vector.load %arg15[%c0_66, %c0_67] : memref<4x4xbf16, #tpu.memory_space<vmem>>, vector<4x4xbf16>
    %cst_68 = arith.constant dense<0.000000e+00> : vector<2x4xf32>
    %128 = tpu.matmul %126, %127, %cst_68 {dimension_numbers = #tpu.dot_dimension_numbers<[1], [0], [0], [1], [0, 0, 1, 1], [], []>} : vector<2x4xbf16>, vector<4x4xbf16>, vector<2x4xf32> -> vector<2x4xf32>
    %c0_69 = arith.constant 0 : index
    %c0_70 = arith.constant 0 : index
    %129 = vector.load %arg16[%c0_69, %c0_70] : memref<1x4xf32, #tpu.memory_space<vmem>>, vector<1x4xf32>
    %130 = vector.broadcast %129 : vector<1x4xf32> to vector<2x4xf32>
    %131 = arith.addf %128, %130 : vector<2x4xf32>
    %132 = arith.negf %131 : vector<2x4xf32>
    %133 = math.exp %132 : vector<2x4xf32>
    %cst_71 = arith.constant 1.000000e+00 : f32
    %134 = vector.broadcast %cst_71 : f32 to vector<2x4xf32>
    %135 = arith.addf %134, %133 : vector<2x4xf32>
    %136 = arith.divf %134, %135 : vector<2x4xf32>
    %c0_72 = arith.constant 0 : index
    %c0_73 = arith.constant 0 : index
    %137 = vector.load %arg17[%c0_72, %c0_73] : memref<2x4xf32, #tpu.memory_space<vmem>>, vector<2x4xf32>
    tpu.vector_store %arg17[%c0_72, %c0_73], %136 {strides = array<i32>} : memref<2x4xf32, #tpu.memory_space<vmem>>, vector<2x4xf32>,
    return
  }
  func.func @transform_0(%arg0: i32) -> (i32, i32) {
    %c0_i32 = arith.constant 0 : i32
    %c0_i32_0 = arith.constant 0 : i32
    return %arg0, %c0_i32 : i32, i32
  }
  func.func @transform_1(%arg0: i32) -> (i32, i32) {
    %c0_i32 = arith.constant 0 : i32
    %c0_i32_0 = arith.constant 0 : i32
    return %arg0, %c0_i32 : i32, i32
  }
  func.func @transform_2(%arg0: i32) -> (i32, i32) {
    %c0_i32 = arith.constant 0 : i32
    %c0_i32_0 = arith.constant 0 : i32
    return %arg0, %c0_i32 : i32, i32
  }
  func.func @transform_3(%arg0: i32) -> (i32, i32) {
    %c0_i32 = arith.constant 0 : i32
    %c0_i32_0 = arith.constant 0 : i32
    %c0_i32_1 = arith.constant 0 : i32
    return %c0_i32, %c0_i32_0 : i32, i32
  }
  func.func @transform_4(%arg0: i32) -> (i32, i32) {
    %c0_i32 = arith.constant 0 : i32
    %c0_i32_0 = arith.constant 0 : i32
    %c0_i32_1 = arith.constant 0 : i32
    return %c0_i32, %c0_i32_0 : i32, i32
  }
  func.func @transform_5(%arg0: i32) -> (i32, i32) {
    %c0_i32 = arith.constant 0 : i32
    %c0_i32_0 = arith.constant 0 : i32
    %c0_i32_1 = arith.constant 0 : i32
    return %c0_i32, %c0_i32_0 : i32, i32
  }
  func.func @transform_6(%arg0: i32) -> (i32, i32) {
    %c0_i32 = arith.constant 0 : i32
    %c0_i32_0 = arith.constant 0 : i32
    %c0_i32_1 = arith.constant 0 : i32
    return %c0_i32, %c0_i32_0 : i32, i32
  }
  func.func @transform_7(%arg0: i32) -> (i32, i32) {
    %c0_i32 = arith.constant 0 : i32
    %c0_i32_0 = arith.constant 0 : i32
    %c0_i32_1 = arith.constant 0 : i32
    return %c0_i32, %c0_i32_0 : i32, i32
  }
  func.func @transform_8(%arg0: i32) -> (i32, i32) {
    %c0_i32 = arith.constant 0 : i32
    %c0_i32_0 = arith.constant 0 : i32
    %c0_i32_1 = arith.constant 0 : i32
    return %c0_i32, %c0_i32_0 : i32, i32
  }
  func.func @transform_9(%arg0: i32) -> (i32, i32) {
    %c0_i32 = arith.constant 0 : i32
    %c0_i32_0 = arith.constant 0 : i32
    %c0_i32_1 = arith.constant 0 : i32
    return %c0_i32, %c0_i32_0 : i32, i32
  }
  func.func @transform_10(%arg0: i32) -> (i32, i32) {
    %c0_i32 = arith.constant 0 : i32
    %c0_i32_0 = arith.constant 0 : i32
    %c0_i32_1 = arith.constant 0 : i32
    return %c0_i32, %c0_i32_0 : i32, i32
  }
  func.func @transform_11(%arg0: i32) -> (i32, i32) {
    %c0_i32 = arith.constant 0 : i32
    %c0_i32_0 = arith.constant 0 : i32
    %c0_i32_1 = arith.constant 0 : i32
    return %c0_i32, %c0_i32_0 : i32, i32
  }
  func.func @transform_12(%arg0: i32) -> (i32, i32) {
    %c0_i32 = arith.constant 0 : i32
    %c0_i32_0 = arith.constant 0 : i32
    %c0_i32_1 = arith.constant 0 : i32
    return %c0_i32, %c0_i32_0 : i32, i32
  }
  func.func @transform_13(%arg0: i32) -> (i32, i32) {
    %c0_i32 = arith.constant 0 : i32
    %c0_i32_0 = arith.constant 0 : i32
    %c0_i32_1 = arith.constant 0 : i32
    return %c0_i32, %c0_i32_0 : i32, i32
  }
  func.func @transform_14(%arg0: i32) -> (i32, i32) {
    %c0_i32 = arith.constant 0 : i32
    %c0_i32_0 = arith.constant 0 : i32
    %c0_i32_1 = arith.constant 0 : i32
    return %c0_i32, %c0_i32_0 : i32, i32
  }
  func.func @transform_15(%arg0: i32) -> (i32, i32) {
    %c0_i32 = arith.constant 0 : i32
    %c0_i32_0 = arith.constant 0 : i32
    %c0_i32_1 = arith.constant 0 : i32
    return %c0_i32, %c0_i32_0 : i32, i32
  }
  func.func @transform_16(%arg0: i32) -> (i32, i32) {
    %c0_i32 = arith.constant 0 : i32
    %c0_i32_0 = arith.constant 0 : i32
    return %arg0, %c0_i32 : i32, i32
  }
}

</mosaic_0001>

<bundles_post_ra>
// kernel: tpu_custom_call.1
= control target key start
LH: loop header
LB: loop body
LE: loop exit
PB: predicated region body
PF: predicated region fallthrough
CT: control target
= control target key end

     0   :  { %s5796_s0 = inlined_call_operand.vmem [shape: f32[2,1024], index: 0, kind: input, shape index: {}]   ;;  %s5797_s1 = inlined_call_operand.vmem [shape: f32[2,1024], index: 1, kind: input, shape index: {}]   ;;  %s5798_s2 = inlined_call_operand.vmem [shape: f32[2,1024], index: 2, kind: input, shape index: {}]   ;;  %s5799_s3 = inlined_call_operand.vmem [shape: f32[1024,4], index: 3, kind: input, shape index: {}]   ;;  %s5800_s4 = inlined_call_operand.vmem [shape: f32[4,1024], index: 4, kind: input, shape index: {}]   ;;  %s5801_s5 = inlined_call_operand.vmem [shape: bf16[1024,256], index: 5, kind: input, shape index: {}]   ;;  %s5802_s6 = inlined_call_operand.vmem [shape: f32[1,256], index: 6, kind: input, shape index: {}]   ;;  %s5803_s7 = inlined_call_operand.vmem [shape: bf16[256,64], index: 7, kind: input, shape index: {}]   ;;  %s5804_s8 = inlined_call_operand.vmem [shape: f32[1,64], index: 8, kind: input, shape index: {}]   ;;  %s5805_s9 = inlined_call_operand.vmem [shape: bf16[64,4], index: 9, kind: input, shape index: {}]   ;;  %s5806_s10 = inlined_call_operand.vmem [shape: bf16[4,4], index: 10, kind: input, shape index: {}]   ;;  %s5807_s11 = inlined_call_operand.vmem [shape: f32[1,4], index: 11, kind: input, shape index: {}]   ;;  %s5808_s12 = inlined_call_operand.vmem [shape: bf16[4,4], index: 12, kind: input, shape index: {}]   ;;  %s5809_s13 = inlined_call_operand.vmem [shape: f32[1,4], index: 13, kind: input, shape index: {}]   ;;  %s5810_s14 = inlined_call_operand.vmem [shape: bf16[4,4], index: 14, kind: input, shape index: {}]   ;;  %s5811_s15 = inlined_call_operand.vmem [shape: f32[1,4], index: 15, kind: input, shape index: {}]   ;;  %s5812_s16 = inlined_call_operand.hbm [shape: f32[2,4], index: 16, kind: output, shape index: {}]  }
   0x1   :  { %5837 = sst [smem:[#allocation21_spill]] %s5796_s0 }
   0x2   :  { %v75_v0 = vld [vmem:[%s5799_s3 + $0x80] sm:$0xff]  ;;  %v76_v1 = vld [vmem:[%s5799_s3 + $0x88] sm:$0xff]  ;;  %v77_v5 = vld [vmem:[%s5799_s3 + $0x90] sm:$0xff]  ;;  %v4339_v12 = vmov 1983009808   ;;  %v195_v14 = vlaneseq }
   0x3   :  { %v59_v2 = vld [vmem:[%s5799_s3] sm:$0xff]  ;;  %v4438_v3 = vpack.c.bf16 %v76_v1, %v75_v0  ;;  %v60_v4 = vld [vmem:[%s5799_s3 + $0x8] sm:$0xff]  ;;  %v78_v6 = vld [vmem:[%s5799_s3 + $0x98] sm:$0xff]  ;;  %v193_v13 = vunpack.c.l.s4 %v4339_v12 }
   0x4   :  { %v4449_v7 = vpack.c.bf16 %v60_v4, %v59_v2  ;;  %v4451_v8 = vpack.c.bf16 %v78_v6, %v77_v5  ;;  %v61_v9 = vld [vmem:[%s5799_s3 + $0x10] sm:$0xff]  ;;  %v62_v10 = vld [vmem:[%s5799_s3 + $0x18] sm:$0xff]  ;;  %v79_v11 = vld [vmem:[%s5799_s3 + $0xa0] sm:$0xff]  ;;  %v4484_v23 = vshrl.u32 %v195_v14, 7 }
   0x5   :  { %3680 = vmatprep.subr.bf16.mxu1 %v4438_v3  ;;  %v80_v15 = vld [vmem:[%s5799_s3 + $0xa8] sm:$0xff]  ;;  %v4467_v16 = vpack.c.bf16 %v62_v10, %v61_v9  ;;  %v63_v18 = vld [vmem:[%s5799_s3 + $0x20] sm:$0xff]  ;;  %v81_v20 = vld [vmem:[%s5799_s3 + $0xb0] sm:$0xff]  ;;  %v194_v22 = vunpack.c.0.s8 %v193_v13 }
   0x6   :  { %3682 = vmatpush3.bf16.msra.mxu1 %v4449_v7  ;;  %v4470_v17 = vpack.c.bf16 %v80_v15, %v79_v11  ;;  %v64_v19 = vld [vmem:[%s5799_s3 + $0x28] sm:$0xff]  ;;  %v82_v21 = vld [vmem:[%s5799_s3 + $0xb8] sm:$0xff]  ;;  %5838 = vst [vmem:[#allocation5_spill] sm:$0xff] %v4484_v23  ;;  %v65_v26 = vld [vmem:[%s5799_s3 + $0x30] sm:$0xff] }
   0x7   :  { %3684 = vmatprep.subr.bf16.mxu1 %v4451_v8  ;;  %v4487_v24 = vpack.c.bf16 %v64_v19, %v63_v18  ;;  %v4490_v25 = vpack.c.bf16 %v82_v21, %v81_v20  ;;  %v66_v27 = vld [vmem:[%s5799_s3 + $0x38] sm:$0xff]  ;;  %v83_v28 = vld [vmem:[%s5799_s3 + $0xc0] sm:$0xff]  ;;  %v84_v29 = vld [vmem:[%s5799_s3 + $0xc8] sm:$0xff]  ;;  %v4510_v31 = vsub.s32 %v194_v22, %v4484_v23 }
   0x8   :  { %v4507_v30 = vld [vmem:[%s5797_s1] sm:$0xff]  ;;  %v4518_v33 = vpack.c.bf16 %v66_v27, %v65_v26  ;;  %v68_v35 = vld [vmem:[%s5799_s3 + $0x48] sm:$0xff]  ;;  %v4534_v38 = vpack.c.bf16 %v84_v29, %v83_v28  ;;  %v85_v42 = vld [vmem:[%s5799_s3 + $0xd0] sm:$0xff] }
   0x9   :  { %5839 = vst [vmem:[#allocation6_spill] sm:$0xff] %v4487_v24  ;;  %5840 = vst [vmem:[#allocation7_spill] sm:$0xff] %v4490_v25  ;;  %v4515_v32 = vld [vmem:[%s5798_s2] sm:$0xff]  ;;  %v140_v39 = vld [vmem:[%s5799_s3 + $0x288] sm:$0xff] }
   0xa   :  { %3686 = vmatpush3.bf16.msra.mxu1 %v4467_v16  ;;  %5841 = vst [vmem:[#allocation8_spill] sm:$0xff] %v4518_v33  ;;  %v67_v34 = vld [vmem:[%s5799_s3 + $0x40] sm:$0xff]  ;;  %v4528_v36 = vmul.f32 %v4515_v32, %v4507_v30  ;;  %5842 = vst [vmem:[#allocation9_spill] sm:$0xff] %v4534_v38  ;;  %v124_v41 = vld [vmem:[%s5799_s3 + $0x208] sm:$0xff] }
   0xb   :  { %3688 = vmatprep.subr.bf16.mxu1 %v4470_v17  ;;  %v139_v37 = vld [vmem:[%s5799_s3 + $0x280] sm:$0xff]  ;;  %v86_v43 = vld [vmem:[%s5799_s3 + $0xd8] sm:$0xff]  ;;  %v141_v47 = vld [vmem:[%s5799_s3 + $0x290] sm:$0xff]  ;;  %v4566_v49 = vpack.c.bf16 %v68_v35, %v67_v34 }
   0xc   :  { %v123_v40 = vld [vmem:[%s5799_s3 + $0x200] sm:$0xff]  ;;  %v4553_v44 = vrot.slane %v4528_v36, %v4510_v31  ;;  %v4555_v45 = vpack.c.bf16 %v140_v39, %v139_v37  ;;  %v142_v48 = vld [vmem:[%s5799_s3 + $0x298] sm:$0xff]  ;;  %v69_v50 = vld [vmem:[%s5799_s3 + $0x50] sm:$0xff]  ;;  %v4583_v55 = vpack.c.bf16 %v86_v43, %v85_v42  ;;  %v191_v21 = vcombine.high %v4528_v36, %v4528_v36 }
   0xd   :  { %v4557_v46 = vpack.c.bf16 %v124_v41, %v123_v40  ;;  %v4574_v52 = vpack.c.bf16 %v142_v48, %v141_v47  ;;  %v125_v53 = vld [vmem:[%s5799_s3 + $0x210] sm:$0xff]  ;;  %v126_v54 = vld [vmem:[%s5799_s3 + $0x218] sm:$0xff]  ;;  %v87_v57 = vld [vmem:[%s5799_s3 + $0xe0] sm:$0xff] }
   0xe   :  { %3690 = vmatpush3.bf16.msra.mxu1 %v4487_v24  ;;  %5843 = vst [vmem:[#allocation10_spill] sm:$0xff] %v4555_v45  ;;  %v206_v51 = vcombine.high %v4553_v44, %v4553_v44  ;;  %3744 = vmatprep.subr.bf16.mxu0 %v4555_v45  ;;  %v70_v56 = vld [vmem:[%s5799_s3 + $0x58] sm:$0xff]  ;;  %v88_v58 = vld [vmem:[%s5799_s3 + $0xe8] sm:$0xff]  ;;  %v4595_v59 = vpack.c.bf16 %v126_v54, %v125_v53  ;;  %v143_v60 = vld [vmem:[%s5799_s3 + $0x2a0] sm:$0xff] }
   0xf   :  { %3692 = vmatprep.subr.bf16.mxu1 %v4490_v25  ;;  %3746 = vmatpush3.bf16.msra.mxu0 %v4557_v46  ;;  %v144_v61 = vld [vmem:[%s5799_s3 + $0x2a8] sm:$0xff]  ;;  %v127_v62 = vld [vmem:[%s5799_s3 + $0x220] sm:$0xff]  ;;  %v4613_v1 = vpack.c.bf16 %v70_v56, %v69_v50  ;;  %v145_v4 = vld [vmem:[%s5799_s3 + $0x2b0] sm:$0xff]  ;;  %v4622_v5 = vpack.c.bf16 %v88_v58, %v87_v57  ;;  %v4696_v43 = vrot.slane %v191_v21, %v4510_v31 }
  0x10   :  { %5844 = vst [vmem:[#allocation11_spill] sm:$0xff] %v4595_v59  ;;  %297 = vmatprep.mubr.f32.mxu1 %v206_v51  ;;  %3748 = vmatprep.subr.bf16.mxu0 %v4574_v52  ;;  %v4607_v63 = vpack.c.bf16 %v144_v61, %v143_v60  ;;  %v128_v0 = vld [vmem:[%s5799_s3 + $0x228] sm:$0xff]  ;;  %v71_v2 = vld [vmem:[%s5799_s3 + $0x60] sm:$0xff]  ;;  %v89_v9 = vld [vmem:[%s5799_s3 + $0xf0] sm:$0xff] }
  0x11   :  { %v72_v6 = vld [vmem:[%s5799_s3 + $0x68] sm:$0xff]  ;;  %v4631_v10 = vpack.c.bf16 %v128_v0, %v127_v62  ;;  %v146_v11 = vld [vmem:[%s5799_s3 + $0x2b8] sm:$0xff]  ;;  %v129_v14 = vld [vmem:[%s5799_s3 + $0x230] sm:$0xff] }
  0x12   :  { %3694 = vmatpush3.bf16.msra.mxu1 %v4518_v33  ;;  %5845 = vst [vmem:[#allocation12_spill] sm:$0xff] %v4607_v63  ;;  %v90_v12 = vld [vmem:[%s5799_s3 + $0xf8] sm:$0xff]  ;;  %v4640_v13 = vpack.c.bf16 %v146_v11, %v145_v4  ;;  %v147_v18 = vld [vmem:[%s5799_s3 + $0x2c0] sm:$0xff]  ;;  %v148_v19 = vld [vmem:[%s5799_s3 + $0x2c8] sm:$0xff]  ;;  %v4655_v20 = vpack.c.bf16 %v72_v6, %v71_v2  ;;  %v207_v4 = vcombine.high %v4696_v43, %v4696_v43 }
  0x13   :  { %3696 = vmatprep.subr.bf16.mxu1 %v4534_v38  ;;  %3750 = vmatpush3.bf16.msra.mxu0 %v4595_v59  ;;  %v130_v15 = vld [vmem:[%s5799_s3 + $0x238] sm:$0xff]  ;;  %v4660_v22 = vpack.c.bf16 %v90_v12, %v89_v9  ;;  %v73_v26 = vld [vmem:[%s5799_s3 + $0x70] sm:$0xff]  ;;  %v107_v28 = vld [vmem:[%s5799_s3 + $0x180] sm:$0xff]  ;;  %v4678_v35 = vpack.c.bf16 %v148_v19, %v147_v18 }
  0x14   :  { %3752 = vmatprep.subr.bf16.mxu0 %v4607_v63  ;;  %5846 = vst [vmem:[#allocation13_spill] sm:$0xff] %v4655_v20  ;;  %v74_v27 = vld [vmem:[%s5799_s3 + $0x78] sm:$0xff]  ;;  %v4672_v29 = vpack.c.bf16 %v130_v15, %v129_v14  ;;  %v108_v34 = vld [vmem:[%s5799_s3 + $0x188] sm:$0xff]  ;;  %v131_v37 = vld [vmem:[%s5799_s3 + $0x240] sm:$0xff] }
  0x15   :  { %5847 = vst [vmem:[#allocation14_spill] sm:$0xff] %v4660_v22  ;;  %v132_v39 = vld [vmem:[%s5799_s3 + $0x248] sm:$0xff]  ;;  %v149_v40 = vld [vmem:[%s5799_s3 + $0x2d0] sm:$0xff]  ;;  %v150_v41 = vld [vmem:[%s5799_s3 + $0x2d8] sm:$0xff]  ;;  %v4693_v42 = vpack.c.bf16 %v74_v27, %v73_v26  ;;  %v4699_v47 = vpack.c.bf16 %v108_v34, %v107_v28 }
  0x16   :  { %3698 = vmatpush3.bf16.msra.mxu1 %v4566_v49  ;;  %v91_v48 = vld [vmem:[%s5799_s3 + $0x100] sm:$0xff]  ;;  %v92_v50 = vld [vmem:[%s5799_s3 + $0x108] sm:$0xff]  ;;  %v109_v51 = vld [vmem:[%s5799_s3 + $0x190] sm:$0xff]  ;;  %v4711_v53 = vpack.c.bf16 %v132_v39, %v131_v37  ;;  %v4717_v56 = vpack.c.bf16 %v150_v41, %v149_v40 }
  0x17   :  { %3700 = vmatprep.subr.bf16.mxu1 %v4583_v55  ;;  %3754 = vmatpush3.bf16.msra.mxu0 %v4631_v10  ;;  %v110_v54 = vld [vmem:[%s5799_s3 + $0x198] sm:$0xff]  ;;  %v133_v57 = vld [vmem:[%s5799_s3 + $0x250] sm:$0xff]  ;;  %v151_v60 = vld [vmem:[%s5799_s3 + $0x2e0] sm:$0xff]  ;;  %v4732_v62 = vpack.c.bf16 %v92_v50, %v91_v48 }
  0x18   :  { %3756 = vmatprep.subr.bf16.mxu0 %v4640_v13  ;;  %v134_v58 = vld [vmem:[%s5799_s3 + $0x258] sm:$0xff]  ;;  %v152_v61 = vld [vmem:[%s5799_s3 + $0x2e8] sm:$0xff]  ;;  %v93_v0 = vld [vmem:[%s5799_s3 + $0x110] sm:$0xff]  ;;  %v4743_v6 = vpack.c.bf16 %v110_v54, %v109_v51 }
  0x19   :  { %v94_v2 = vld [vmem:[%s5799_s3 + $0x118] sm:$0xff]  ;;  %v111_v9 = vld [vmem:[%s5799_s3 + $0x1a0] sm:$0xff]  ;;  %v4749_v11 = vpack.c.bf16 %v134_v58, %v133_v57  ;;  %v4754_v12 = vld [vmem:[%s5797_s1 + $0x8] sm:$0xff]  ;;  %v4765_v18 = vpack.c.bf16 %v152_v61, %v151_v60  ;;  %v4818_v60 = vmul.f32 %v4528_v36, %v4507_v30 }
  0x1a   :  { %3702 = vmatpush3.bf16.msra.mxu1 %v4613_v1  ;;  %v4759_v14 = vld [vmem:[%s5798_s2 + $0x8] sm:$0xff]  ;;  %v135_v19 = vld [vmem:[%s5799_s3 + $0x260] sm:$0xff]  ;;  %v153_v27 = vld [vmem:[%s5799_s3 + $0x2f0] sm:$0xff]  ;;  %v4785_v34 = vpack.c.bf16 %v94_v2, %v93_v0 }
  0x1b   :  { %3704 = vmatprep.subr.bf16.mxu1 %v4622_v5  ;;  %3758 = vmatpush3.bf16.msra.mxu0 %v4672_v29  ;;  %5848 = vst [vmem:[#allocation15_spill] sm:$0xff] %v4759_v14  ;;  %v112_v15 = vld [vmem:[%s5799_s3 + $0x1a8] sm:$0xff]  ;;  %v4775_v26 = vmul.f32 %v4759_v14, %v4754_v12  ;;  %v154_v28 = vld [vmem:[%s5799_s3 + $0x2f8] sm:$0xff]  ;;  %v113_v41 = vld [vmem:[%s5799_s3 + $0x1b0] sm:$0xff] }
  0x1c   :  { %3760 = vmatprep.subr.bf16.mxu0 %v4678_v35  ;;  %v136_v21 = vld [vmem:[%s5799_s3 + $0x268] sm:$0xff]  ;;  %v4790_v39 = vpack.c.bf16 %v112_v15, %v111_v9  ;;  %v114_v50 = vld [vmem:[%s5799_s3 + $0x1b8] sm:$0xff]  ;;  %v4808_v51 = vpack.c.bf16 %v154_v28, %v153_v27  ;;  %v137_v54 = vld [vmem:[%s5799_s3 + $0x270] sm:$0xff]  ;;  %v4844_v15 = vrot.slane %v4818_v60, %v4510_v31 }
  0x1d   :  { %v215_v37 = vrot.slane %v4775_v26, %v4510_v31  ;;  %v96_v40 = vld [vmem:[%s5799_s3 + $0x128] sm:$0xff]  ;;  %v4802_v48 = vpack.c.bf16 %v136_v21, %v135_v19  ;;  %v138_v57 = vld [vmem:[%s5799_s3 + $0x278] sm:$0xff]  ;;  %v4824_v0 = vpack.c.bf16 %v114_v50, %v113_v41  ;;  %v97_v2 = vld [vmem:[%s5799_s3 + $0x130] sm:$0xff] }
  0x1e   :  { %3706 = vmatpush3.bf16.msra.mxu1 %v4655_v20  ;;  %v4833_v30 = vpack.c.bf16 %v138_v57, %v137_v54  ;;  %v115_v36 = vld [vmem:[%s5799_s3 + $0x1c0] sm:$0xff]  ;;  %v116_v9 = vld [vmem:[%s5799_s3 + $0x1c8] sm:$0xff]  ;;  %v117_v28 = vld [vmem:[%s5799_s3 + $0x1d0] sm:$0xff]  ;;  %v532_v41 = vcombine.high %v4844_v15, %v4844_v15 }
  0x1f   :  { %3708 = vmatprep.subr.bf16.mxu1 %v4660_v22  ;;  %3762 = vmatpush3.bf16.msra.mxu0 %v4711_v53  ;;  %v223_v58 = vcombine.high %v215_v37, %v215_v37  ;;  %v99_v19 = vld [vmem:[%s5799_s3 + $0x140] sm:$0xff]  ;;  %v100_v21 = vld [vmem:[%s5799_s3 + $0x148] sm:$0xff]  ;;  %v101_v50 = vld [vmem:[%s5799_s3 + $0x150] sm:$0xff] }
  0x20   :  { %3764 = vmatprep.subr.bf16.mxu0 %v4717_v56  ;;  %v102_v54 = vld [vmem:[%s5799_s3 + $0x158] sm:$0xff]  ;;  %v4875_v57 = vpack.c.bf16 %v100_v21, %v99_v19  ;;  %v121_v19 = vld [vmem:[%s5799_s3 + $0x1f0] sm:$0xff] }
  0x21   :  { %437 = vmatprep.mubr.f32.mxu0 %v223_v58  ;;  %v119_v58 = vld [vmem:[%s5799_s3 + $0x1e0] sm:$0xff]  ;;  %v122_v21 = vld [vmem:[%s5799_s3 + $0x1f8] sm:$0xff] }
  0x22   :  { %3710 = vmatpush3.bf16.msra.mxu1 %v4693_v42  ;;  %v4926_v23 = vpack.c.bf16 %v122_v21, %v121_v19  ;;  %v173_v19 = vld [vmem:[%s5799_s3 + $0x390] sm:$0xff]  ;;  %v174_v21 = vld [vmem:[%s5799_s3 + $0x398] sm:$0xff] }
  0x23   :  { %3712 = vmatprep.subr.bf16.mxu1 %v4699_v47  ;;  %3766 = vmatpush3.bf16.msra.mxu0 %v4749_v11 }
  0x24   :  { %3768 = vmatprep.subr.bf16.mxu0 %v4765_v18 }
  0x25   :  { %298 = vmatmul.mubr.f32.vlgmr.msra.gmra.mrb[0].mxu1 %v4553_v44  ;;  %v95_v44 = vld [vmem:[%s5799_s3 + $0x120] sm:$0xff] }
  0x26   :  { %3714 = vmatpush3.bf16.msra.mxu1 %v4732_v62  ;;  %367 = vmatprep.mubr.f32.mxu1 %v207_v4  ;;  %v4821_v61 = vpack.c.bf16 %v96_v40, %v95_v44  ;;  %v98_v4 = vld [vmem:[%s5799_s3 + $0x138] sm:$0xff]  ;;  %v4862_v40 = vpack.c.bf16 %v116_v9, %v115_v36  ;;  %v103_v36 = vld [vmem:[%s5799_s3 + $0x160] sm:$0xff]  ;;  %v104_v9 = vld [vmem:[%s5799_s3 + $0x168] sm:$0xff] }
  0x27   :  { %3716 = vmatprep.subr.bf16.mxu1 %v4743_v6  ;;  %3770 = vmatpush3.bf16.msra.mxu0 %v4802_v48  ;;  %v4853_v27 = vpack.c.bf16 %v98_v4, %v97_v2  ;;  %v118_v44 = vld [vmem:[%s5799_s3 + $0x1d8] sm:$0xff]  ;;  %v120_v2 = vld [vmem:[%s5799_s3 + $0x1e8] sm:$0xff] }
  0x28   :  { %3772 = vmatprep.subr.bf16.mxu0 %v4808_v51  ;;  %v4884_v4 = vpack.c.bf16 %v118_v44, %v117_v28  ;;  %v4904_v28 = vpack.c.bf16 %v120_v2, %v119_v58  ;;  %v105_v44 = vld [vmem:[%s5799_s3 + $0x170] sm:$0xff]  ;;  %v172_v58 = vld [vmem:[%s5799_s3 + $0x388] sm:$0xff]  ;;  %v208_v2 = vcombine.high %v4775_v26, %v4775_v26 }
  0x2a   :  { %3718 = vmatpush3.bf16.msra.mxu1 %v4785_v34 }
  0x2b   :  { %3720 = vmatprep.subr.bf16.mxu1 %v4790_v39  ;;  %3774 = vmatpush3.bf16.msra.mxu0 %v4833_v30 }
  0x2c   :  { %3808 = vmatprep.subr.bf16.mxu0 %v4438_v3 }
  0x2e   :  { %3722 = vmatpush3.bf16.msra.mxu1 %v4821_v61  ;;  %438 = vmatmul.mubr.f32.vlgmr.msra.gmra.mrb[0].mxu0 %v215_v37  ;;  %v4895_v37 = vpack.c.bf16 %v102_v54, %v101_v50  ;;  %v4915_v50 = vpack.c.bf16 %v104_v9, %v103_v36  ;;  %v171_v54 = vld [vmem:[%s5799_s3 + $0x380] sm:$0xff]  ;;  %v156_v9 = vld [vmem:[%s5799_s3 + $0x308] sm:$0xff] }
  0x2f   :  { %3724 = vmatprep.subr.bf16.mxu1 %v4824_v0  ;;  %3810 = vmatpush3.bf16.msra.mxu0 %v4449_v7  ;;  %v155_v36 = vld [vmem:[%s5799_s3 + $0x300] sm:$0xff] }
  0x30   :  { %3812 = vmatprep.subr.bf16.mxu0 %v4451_v8  ;;  %623 = vmatprep.mubr.f32.mxu0 %v532_v41  ;;  %v106_v41 = vld [vmem:[%s5799_s3 + $0x178] sm:$0xff] }
  0x31   :  { %v4937_v14 = vpack.c.bf16 %v106_v41, %v105_v44  ;;  %v157_v44 = vld [vmem:[%s5799_s3 + $0x310] sm:$0xff]  ;;  %v158_v41 = vld [vmem:[%s5799_s3 + $0x318] sm:$0xff] }
  0x32   :  { %3726 = vmatpush3.bf16.msra.mxu1 %v4853_v27 }
  0x33   :  { %3728 = vmatprep.subr.bf16.mxu1 %v4862_v40  ;;  %3814 = vmatpush3.bf16.msra.mxu0 %v4467_v16  ;;  %5849 = vst [vmem:[#allocation16_spill] sm:$0xff] %v4937_v14 }
  0x34   :  { %3816 = vmatprep.subr.bf16.mxu0 %v4470_v17 }
  0x36   :  { %3730 = vmatpush3.bf16.msra.mxu1 %v4875_v57 }
  0x37   :  { %3732 = vmatprep.subr.bf16.mxu1 %v4884_v4  ;;  %3818 = vmatpush3.bf16.msra.mxu0 %v4487_v24  ;;  %v4949_v24 = vpack.c.bf16 %v172_v58, %v171_v54  ;;  %v175_v54 = vld [vmem:[%s5799_s3 + $0x3a0] sm:$0xff]  ;;  %v176_v58 = vld [vmem:[%s5799_s3 + $0x3a8] sm:$0xff] }
  0x38   :  { %3820 = vmatprep.subr.bf16.mxu0 %v4490_v25  ;;  %v4946_v25 = vrot.slane %v208_v2, %v4510_v31  ;;  %v4960_v2 = vpack.c.bf16 %v156_v9, %v155_v36  ;;  %v159_v36 = vld [vmem:[%s5799_s3 + $0x320] sm:$0xff]  ;;  %v160_v9 = vld [vmem:[%s5799_s3 + $0x328] sm:$0xff] }
  0x3a   :  { %3734 = vmatpush3.bf16.msra.mxu1 %v4895_v37 }
  0x3b   :  { %3736 = vmatprep.subr.bf16.mxu1 %v4904_v28  ;;  %3822 = vmatpush3.bf16.msra.mxu0 %v4518_v33  ;;  %v4971_v33 = vpack.c.bf16 %v174_v21, %v173_v19  ;;  %v177_v19 = vld [vmem:[%s5799_s3 + $0x3b0] sm:$0xff]  ;;  %v4992_v21 = vpack.c.bf16 %v176_v58, %v175_v54  ;;  %v5007_v54 = vpack.c.bf16 %v160_v9, %v159_v36  ;;  %v179_v58 = vld [vmem:[%s5799_s3 + $0x3c0] sm:$0xff] }
  0x3c   :  { %3824 = vmatprep.subr.bf16.mxu0 %v4534_v38  ;;  %v224_v38 = vcombine.high %v4946_v25, %v4946_v25  ;;  %v163_v9 = vld [vmem:[%s5799_s3 + $0x340] sm:$0xff] }
  0x3d   :  { %5851 = vst [vmem:[#allocation18_spill] sm:$0xff] %v5007_v54 }
  0x3e   :  { %3738 = vmatpush3.bf16.msra.mxu1 %v4915_v50 }
  0x3f   :  { %3740 = vmatprep.subr.bf16.mxu1 %v4926_v23  ;;  %3826 = vmatpush3.bf16.msra.mxu0 %v4566_v49 }
  0x40   :  { %3828 = vmatprep.subr.bf16.mxu0 %v4583_v55 }
  0x42   :  { %3742 = vmatpush3.bf16.msra.mxu1 %v4937_v14  ;;  %v4983_v14 = vpack.c.bf16 %v158_v41, %v157_v44  ;;  %v4998_v44 = vmul.f32 %v4775_v26, %v4754_v12  ;;  %v161_v41 = vld [vmem:[%s5799_s3 + $0x330] sm:$0xff]  ;;  %v180_v12 = vld [vmem:[%s5799_s3 + $0x3c8] sm:$0xff] }
  0x43   :  { %3776 = vmatprep.subr.bf16.mxu1 %v4949_v24  ;;  %3830 = vmatpush3.bf16.msra.mxu0 %v4613_v1 }
  0x44   :  { %5850 = vst [vmem:[#allocation17_spill] sm:$0xff] %v4983_v14  ;;  %3832 = vmatprep.subr.bf16.mxu0 %v4622_v5  ;;  %v5022_v36 = vrot.slane %v4998_v44, %v4510_v31 }
  0x45   :  { %368 = vmatmul.mubr.f32.vlgmr.msra.gmra.mrb[2].mxu1 %v4696_v43  ;;  %v178_v43 = vld [vmem:[%s5799_s3 + $0x3b8] sm:$0xff] }
  0x46   :  { %3778 = vmatpush3.bf16.msra.mxu1 %v4960_v2  ;;  %507 = vmatprep.mubr.f32.mxu1 %v224_v38  ;;  %v162_v38 = vld [vmem:[%s5799_s3 + $0x338] sm:$0xff]  ;;  %v5016_v26 = vpack.c.bf16 %v178_v43, %v177_v19  ;;  %v181_v43 = vld [vmem:[%s5799_s3 + $0x3d0] sm:$0xff] }
  0x47   :  { %3780 = vmatprep.subr.bf16.mxu1 %v4971_v33  ;;  %3834 = vmatpush3.bf16.msra.mxu0 %v4655_v20  ;;  %v5031_v19 = vpack.c.bf16 %v162_v38, %v161_v41  ;;  %v5040_v20 = vpack.c.bf16 %v180_v12, %v179_v58  ;;  %v549_v41 = vcombine.high %v5022_v36, %v5022_v36  ;;  %v165_v38 = vld [vmem:[%s5799_s3 + $0x350] sm:$0xff]  ;;  %v183_v58 = vld [vmem:[%s5799_s3 + $0x3e0] sm:$0xff]  ;;  %v184_v12 = vld [vmem:[%s5799_s3 + $0x3e8] sm:$0xff] }
  0x48   :  { %5852 = vst [vmem:[#allocation19_spill] sm:$0xff] %v5016_v26  ;;  %3836 = vmatprep.subr.bf16.mxu0 %v4660_v22  ;;  %v182_v22 = vld [vmem:[%s5799_s3 + $0x3d8] sm:$0xff] }
  0x4a   :  { %3782 = vmatpush3.bf16.msra.mxu1 %v4983_v14  ;;  %v164_v14 = vld [vmem:[%s5799_s3 + $0x348] sm:$0xff] }
  0x4b   :  { %3784 = vmatprep.subr.bf16.mxu1 %v4992_v21  ;;  %3838 = vmatpush3.bf16.msra.mxu0 %v4693_v42 }
  0x4c   :  { %3872 = vmatprep.subr.bf16.mxu0 %v4555_v45  ;;  %v5063_v45 = vpack.c.bf16 %v182_v22, %v181_v43  ;;  %v185_v22 = vld [vmem:[%s5799_s3 + $0x3f0] sm:$0xff]  ;;  %v186_v43 = vld [vmem:[%s5799_s3 + $0x3f8] sm:$0xff] }
  0x4e   :  { %3786 = vmatpush3.bf16.msra.mxu1 %v5007_v54  ;;  %v166_v54 = vld [vmem:[%s5799_s3 + $0x358] sm:$0xff]  ;;  %624 = vmatmul.mubr.f32.vlgmr.msra.gmra.mrb[2].mxu0 %v4844_v15 }
  0x4f   :  { %3788 = vmatprep.subr.bf16.mxu1 %v5016_v26  ;;  %v5053_v26 = vpack.c.bf16 %v164_v14, %v163_v9  ;;  %3874 = vmatpush3.bf16.msra.mxu0 %v4557_v46  ;;  %v167_v14 = vld [vmem:[%s5799_s3 + $0x360] sm:$0xff]  ;;  %v168_v9 = vld [vmem:[%s5799_s3 + $0x368] sm:$0xff]  ;;  %v5074_v15 = vpack.c.bf16 %v166_v54, %v165_v38  ;;  %v169_v54 = vld [vmem:[%s5799_s3 + $0x370] sm:$0xff] }
  0x50   :  { %3876 = vmatprep.subr.bf16.mxu0 %v4574_v52  ;;  %763 = vmatprep.mubr.f32.mxu0 %v549_v41  ;;  %v5083_v41 = vpack.c.bf16 %v184_v12, %v183_v58  ;;  %v170_v38 = vld [vmem:[%s5799_s3 + $0x378] sm:$0xff]  ;;  %v517_v58 = vcombine.high %v4818_v60, %v4818_v60  ;;  %v5099_v12 = vpack.c.bf16 %v186_v43, %v185_v22 }
  0x51   :  { %5853 = vst [vmem:[#allocation20_spill] sm:$0xff] %v5053_v26 }
  0x52   :  { %3790 = vmatpush3.bf16.msra.mxu1 %v5031_v19 }
  0x53   :  { %3792 = vmatprep.subr.bf16.mxu1 %v5040_v20  ;;  %3878 = vmatpush3.bf16.msra.mxu0 %v4595_v59  ;;  %v531_v59 = vrot.slane %v517_v58, %v4510_v31 }
  0x54   :  { %3880 = vmatprep.subr.bf16.mxu0 %v4607_v63  ;;  %v5104_v63 = vpack.c.bf16 %v170_v38, %v169_v54 }
  0x55   :  { %v533_v60 = vcombine.high %v531_v59, %v531_v59 }
  0x56   :  { %3794 = vmatpush3.bf16.msra.mxu1 %v5053_v26  ;;  %v5094_v26 = vpack.c.bf16 %v168_v9, %v167_v14 }
  0x57   :  { %3796 = vmatprep.subr.bf16.mxu1 %v5063_v45  ;;  %3882 = vmatpush3.bf16.msra.mxu0 %v4631_v10 }
  0x58   :  { %3884 = vmatprep.subr.bf16.mxu0 %v4640_v13 }
  0x5a   :  { %3798 = vmatpush3.bf16.msra.mxu1 %v5074_v15 }
  0x5b   :  { %3800 = vmatprep.subr.bf16.mxu1 %v5083_v41  ;;  %3886 = vmatpush3.bf16.msra.mxu0 %v4672_v29 }
  0x5c   :  { %3888 = vmatprep.subr.bf16.mxu0 %v4678_v35 }
  0x5e   :  { %3802 = vmatpush3.bf16.msra.mxu1 %v5094_v26 }
  0x5f   :  { %3804 = vmatprep.subr.bf16.mxu1 %v5099_v12  ;;  %3890 = vmatpush3.bf16.msra.mxu0 %v4711_v53 }
  0x60   :  { %3892 = vmatprep.subr.bf16.mxu0 %v4717_v56 }
  0x62   :  { %3806 = vmatpush3.bf16.msra.mxu1 %v5104_v63 }
  0x63   :  { %3840 = vmatprep.subr.bf16.mxu1 %v4699_v47 }
  0x65   :  { %508 = vmatmul.mubr.f32.vlgmr.msra.gmra.mrb[4].mxu1 %v4946_v25 }
  0x66   :  { %3842 = vmatpush3.bf16.msra.mxu1 %v4732_v62  ;;  %693 = vmatprep.mubr.f32.mxu1 %v533_v60 }
  0x67   :  { %21 = vsyncpa [#allocation3], 0  ;;  %3844 = vmatprep.subr.bf16.mxu1 %v4743_v6  ;;  %3894 = vmatpush3.bf16.msra.mxu0 %v4749_v11  ;;  %v848_v25 = vrot.slane %v4515_v32, %v4510_v31  ;;  %v5854_v32 = vld [vmem:[#allocation6_spill] sm:$0xff]  ;;  %v5860_v22 = vld [vmem:[#allocation13_spill] sm:$0xff]  ;;  %vm1186_vm0 = vcmask 1043456   ;;  %vm1182_vm1 = vcmask 31744  }
  0x68   :  { %3896 = vmatprep.subr.bf16.mxu0 %v4765_v18  ;;  %v5861_v43 = vld [vmem:[#allocation14_spill] sm:$0xff]  ;;  %v5864_v54 = vld [vmem:[#allocation19_spill] sm:$0xff]  ;;  %v5866_v38 = vld [vmem:[#allocation20_spill] sm:$0xff]  ;;  %s5869_s29 = sld [smem:[#allocation21_spill]]  ;;  %vm2722_vm2 = vcmask 1041408   ;;  %vm4341_vm3 = vmmov 0  }
  0x69   :  { %v856_v14 = vcombine.high %v848_v25, %v848_v25  ;;  %v5867_v58 = vld [vmem:[#allocation11_spill] sm:$0xff]  ;;  %v4314_v60 = vld [vmem:[%s5798_s2] sm:$0xff]  ;;  %vm2790_vm4 = vcmask 523264   ;;  %s4343_s1 = smov [#allocation2]   ;;  %vm3010_vm7 = vcmask 25600  }
  0x6a   :  { %3846 = vmatpush3.bf16.msra.mxu1 %v4785_v34  ;;  %s3018_s18 = sshll.u32 %s4343_s1, 4  ;;  %s3019_s18 = int_to_ptr.vmem [resolvable:$true] %s3018_s18 }
  0x6b   :  { %3848 = vmatprep.subr.bf16.mxu1 %v4790_v39  ;;  %3898 = vmatpush3.bf16.msra.mxu0 %v4802_v48  ;;  %s4315_s19 = scalar_lea.vmem %s3019_s18, 32  ;;  %p4320_p1 = scmp.lt.s32.totalorder %s3019_s18, %s3019_s18 }
  0x6c   :  { %3900 = vmatprep.subr.bf16.mxu0 %v4808_v51  ;;  %p4316_p0 = scmp.ne.s32.totalorder %s3019_s18, %s4315_s19  ;;  %p4321_p2 = scmp.lt.s32.totalorder %s4315_s19, %s4315_s19 }
  0x6e   :  { %3850 = vmatpush3.bf16.msra.mxu1 %v4821_v61  ;;  %p4322_p3 = por %p4321_p2, %p4320_p1 }
  0x6f   :  { %3852 = vmatprep.subr.bf16.mxu1 %v4824_v0  ;;  %3902 = vmatpush3.bf16.msra.mxu0 %v4833_v30 }
  0x70   :  { %3936 = vmatprep.subr.bf16.mxu0 %v4438_v3  ;;  %v534_v3 = vcombine.high %v4998_v44, %v4998_v44  ;;  %v5859_v44 = vld [vmem:[#allocation17_spill] sm:$0xff]  ;;  %p4323_p4 = pnand %p4322_p3, %p4316_p0 }
  0x72   :  { %3854 = vmatpush3.bf16.msra.mxu1 %v4853_v27  ;;  %764 = vmatmul.mubr.f32.vlgmr.msra.gmra.mrb[4].mxu0 %v5022_v36  ;;  %v5858_v36 = vld [vmem:[#allocation16_spill] sm:$0xff] }
  0x73   :  { %3856 = vmatprep.subr.bf16.mxu1 %v4862_v40  ;;  %3938 = vmatpush3.bf16.msra.mxu0 %v4449_v7  ;;  %v5855_v7 = vld [vmem:[#allocation7_spill] sm:$0xff] }
  0x74   :  { %3940 = vmatprep.subr.bf16.mxu0 %v4451_v8  ;;  %947 = vmatprep.mubr.f32.mxu0 %v856_v14  ;;  %v548_v8 = vrot.slane %v534_v3, %v4510_v31 }
  0x76   :  { %3858 = vmatpush3.bf16.msra.mxu1 %v4875_v57  ;;  %v550_v9 = vcombine.high %v548_v8, %v548_v8 }
  0x77   :  { %3860 = vmatprep.subr.bf16.mxu1 %v4884_v4  ;;  %3942 = vmatpush3.bf16.msra.mxu0 %v4467_v16  ;;  %v5856_v16 = vld [vmem:[#allocation8_spill] sm:$0xff] }
  0x78   :  { %3944 = vmatprep.subr.bf16.mxu0 %v4470_v17  ;;  %v5857_v17 = vld [vmem:[#allocation9_spill] sm:$0xff] }
  0x7a   :  { %3862 = vmatpush3.bf16.msra.mxu1 %v4895_v37 }
  0x7b   :  { %3864 = vmatprep.subr.bf16.mxu1 %v4904_v28  ;;  %3946 = vmatpush3.bf16.msra.mxu0 %v5854_v32 }
  0x7c   :  { %3948 = vmatprep.subr.bf16.mxu0 %v5855_v7 }
  0x7e   :  { %3866 = vmatpush3.bf16.msra.mxu1 %v4915_v50 }
  0x7f   :  { %3868 = vmatprep.subr.bf16.mxu1 %v4926_v23  ;;  %3950 = vmatpush3.bf16.msra.mxu0 %v5856_v16 }
  0x80   :  { %3952 = vmatprep.subr.bf16.mxu0 %v5857_v17 }
  0x82   :  { %3870 = vmatpush3.bf16.msra.mxu1 %v5858_v36 }
  0x83   :  { %3904 = vmatprep.subr.bf16.mxu1 %v4949_v24  ;;  %3954 = vmatpush3.bf16.msra.mxu0 %v4566_v49  ;;  %v5862_v49 = vld [vmem:[#allocation15_spill] sm:$0xff] }
  0x84   :  { %3956 = vmatprep.subr.bf16.mxu0 %v4583_v55  ;;  %v865_v55 = vrot.slane %v5862_v49, %v4510_v31 }
  0x85   :  { %694 = vmatmul.mubr.f32.vlgmr.msra.gmra.mrb[6].mxu1 %v531_v59  ;;  %v5863_v59 = vld [vmem:[#allocation18_spill] sm:$0xff] }
  0x86   :  { %3906 = vmatpush3.bf16.msra.mxu1 %v4960_v2  ;;  %833 = vmatprep.mubr.f32.mxu1 %v550_v9 }
  0x87   :  { %3908 = vmatprep.subr.bf16.mxu1 %v4971_v33  ;;  %3958 = vmatpush3.bf16.msra.mxu0 %v4613_v1  ;;  %v5865_v1 = vld [vmem:[#allocation10_spill] sm:$0xff] }
  0x88   :  { %3960 = vmatprep.subr.bf16.mxu0 %v4622_v5  ;;  %v873_v5 = vcombine.high %v865_v55, %v865_v55 }
  0x8a   :  { %3910 = vmatpush3.bf16.msra.mxu1 %v5859_v44 }
  0x8b   :  { %3912 = vmatprep.subr.bf16.mxu1 %v4992_v21  ;;  %3962 = vmatpush3.bf16.msra.mxu0 %v5860_v22 }
  0x8c   :  { %3964 = vmatprep.subr.bf16.mxu0 %v5861_v43 }
  0x8e   :  { %3914 = vmatpush3.bf16.msra.mxu1 %v5863_v59 }
  0x8f   :  { %3916 = vmatprep.subr.bf16.mxu1 %v5864_v54  ;;  %3966 = vmatpush3.bf16.msra.mxu0 %v4693_v42  ;;  %v5868_v42 = vld [vmem:[#allocation12_spill] sm:$0xff] }
  0x90   :  { %4000 = vmatprep.subr.bf16.mxu0 %v5865_v1 }
  0x92   :  { %3918 = vmatpush3.bf16.msra.mxu1 %v5031_v19  ;;  %948 = vmatmul.mubr.f32.vlgmr.msra.gmra.mrb[6].mxu0 %v848_v25  ;;  %v841_v25 = vcombine.high %v4314_v60, %v4314_v60 }
  0x93   :  { %3920 = vmatprep.subr.bf16.mxu1 %v5040_v20  ;;  %4002 = vmatpush3.bf16.msra.mxu0 %v4557_v46 }
  0x94   :  { %4004 = vmatprep.subr.bf16.mxu0 %v4574_v52  ;;  %1087 = vmatprep.mubr.f32.mxu0 %v873_v5  ;;  %v855_v46 = vrot.slane %v841_v25, %v4510_v31 }
  0x96   :  { %3922 = vmatpush3.bf16.msra.mxu1 %v5866_v38  ;;  %v857_v52 = vcombine.high %v855_v46, %v855_v46 }
  0x97   :  { %3924 = vmatprep.subr.bf16.mxu1 %v5063_v45  ;;  %4006 = vmatpush3.bf16.msra.mxu0 %v5867_v58  ;;  %v1172_v58 = vld [vmem:[%s5800_s4 + $0x10] sm:$0xff] }
  0x98   :  { %4008 = vmatprep.subr.bf16.mxu0 %v5868_v42  ;;  %v1180_v25 = vcombine.high %v1172_v58, %v1172_v58 }
  0x9a   :  { %3926 = vmatpush3.bf16.msra.mxu1 %v5074_v15 }
  0x9b   :  { %3928 = vmatprep.subr.bf16.mxu1 %v5083_v41  ;;  %4010 = vmatpush3.bf16.msra.mxu0 %v4631_v10  ;;  %v858_v10 = vcombine.high %v5862_v49, %v5862_v49 }
  0x9c   :  { %4012 = vmatprep.subr.bf16.mxu0 %v4640_v13 }
  0x9d   :  { %v872_v13 = vrot.slane %v858_v10, %v4510_v31 }
  0x9e   :  { %3930 = vmatpush3.bf16.msra.mxu1 %v5094_v26 }
  0x9f   :  { %3932 = vmatprep.subr.bf16.mxu1 %v5099_v12  ;;  %4014 = vmatpush3.bf16.msra.mxu0 %v4672_v29  ;;  %v874_v29 = vcombine.high %v872_v13, %v872_v13 }
  0xa0   :  { %4016 = vmatprep.subr.bf16.mxu0 %v4678_v35 }
  0xa2   :  { %3934 = vmatpush3.bf16.msra.mxu1 %v5104_v63 }
  0xa3   :  { %3968 = vmatprep.subr.bf16.mxu1 %v4699_v47  ;;  %4018 = vmatpush3.bf16.msra.mxu0 %v4711_v53 }
  0xa4   :  { %4020 = vmatprep.subr.bf16.mxu0 %v4717_v56 }
  0xa5   :  { %834 = vmatmul.mubr.f32.vlgmr.msra.gmra.mrb[8].mxu1 %v548_v8 }
  0xa6   :  { %3970 = vmatpush3.bf16.msra.mxu1 %v4732_v62  ;;  %1017 = vmatprep.mubr.f32.mxu1 %v857_v52  ;;  %v4094_v52 = vld [vmem:[%s5801_s5 + $0x14] ss:$8 sps:$4 sm:$0xff]  }
  0xa7   :  { %3972 = vmatprep.subr.bf16.mxu1 %v4743_v6  ;;  %4022 = vmatpush3.bf16.msra.mxu0 %v4749_v11 }
  0xa8   :  { %4024 = vmatprep.subr.bf16.mxu0 %v4765_v18 }
  0xaa   :  { %3974 = vmatpush3.bf16.msra.mxu1 %v4785_v34 }
  0xab   :  { %3976 = vmatprep.subr.bf16.mxu1 %v4790_v39  ;;  %4026 = vmatpush3.bf16.msra.mxu0 %v4802_v48 }
  0xac   :  { %4028 = vmatprep.subr.bf16.mxu0 %v4808_v51 }
  0xae   :  { %3978 = vmatpush3.bf16.msra.mxu1 %v4821_v61 }
  0xaf   :  { %3980 = vmatprep.subr.bf16.mxu1 %v4824_v0  ;;  %4030 = vmatpush3.bf16.msra.mxu0 %v4833_v30  ;;  %v1173_v0 = vld [vmem:[%s5800_s4 + $0x18] sm:$0xff]  ;;  %v1171_v30 = vld [vmem:[%s5800_s4 + $0x8] sm:$0xff] }
  0xb2   :  { %3982 = vmatpush3.bf16.msra.mxu1 %v4853_v27  ;;  %1088 = vmatmul.mubr.f32.vlgmr.msra.gmra.mrb[8].mxu0 %v865_v55 }
  0xb3   :  { %3984 = vmatprep.subr.bf16.mxu1 %v4862_v40  ;;  %v1181_v40 = vcombine.high %v1173_v0, %v1173_v0 }
  0xb6   :  { %3986 = vmatpush3.bf16.msra.mxu1 %v4875_v57  ;;  %v4340_v57 = vmov 0.0  }
  0xb7   :  { %3988 = vmatprep.subr.bf16.mxu1 %v4884_v4  ;;  %1267 = vmatprep.mubr.f32.mxu0 %v4340_v57  ;;  %v1179_v4 = vcombine.high %v1171_v30, %v1171_v30 }
  0xba   :  { %3990 = vmatpush3.bf16.msra.mxu1 %v4895_v37 }
  0xbb   :  { %3992 = vmatprep.subr.bf16.mxu1 %v4904_v28 }
  0xbe   :  { %3994 = vmatpush3.bf16.msra.mxu1 %v4915_v50 }
  0xbf   :  { %3996 = vmatprep.subr.bf16.mxu1 %v4926_v23 }
  0xc2   :  { %3998 = vmatpush3.bf16.msra.mxu1 %v5858_v36 }
  0xc3   :  { %4032 = vmatprep.subr.bf16.mxu1 %v4949_v24 }
  0xc5   :  { %1018 = vmatmul.mubr.f32.vlgmr.msra.gmra.mrb[10].mxu1 %v855_v46  ;;  %v4086_v46 = vld [vmem:[%s5801_s5] ss:$8 sps:$4 sm:$0xff]  }
  0xc6   :  { %4034 = vmatpush3.bf16.msra.mxu1 %v4960_v2  ;;  %1157 = vmatprep.mubr.f32.mxu1 %v874_v29  ;;  %v4088_v2 = vld [vmem:[%s5801_s5 + $0x4] ss:$8 sps:$4 sm:$0xff]   ;;  %v4092_v29 = vld [vmem:[%s5801_s5 + $0x10] ss:$8 sps:$4 sm:$0xff]  }
  0xc7   :  { %4036 = vmatprep.subr.bf16.mxu1 %v4971_v33 }
  0xca   :  { %4038 = vmatpush3.bf16.msra.mxu1 %v5859_v44 }
  0xcb   :  { %4040 = vmatprep.subr.bf16.mxu1 %v4992_v21 }
  0xce   :  { %4042 = vmatpush3.bf16.msra.mxu1 %v5863_v59 }
  0xcf   :  { %4044 = vmatprep.subr.bf16.mxu1 %v5864_v54 }
  0xd2   :  { %4046 = vmatpush3.bf16.msra.mxu1 %v5031_v19 }
  0xd3   :  { %4048 = vmatprep.subr.bf16.mxu1 %v5040_v20 }
  0xd6   :  { %4050 = vmatpush3.bf16.msra.mxu1 %v5866_v38 }
  0xd7   :  { %4052 = vmatprep.subr.bf16.mxu1 %v5063_v45 }
  0xda   :  { %4054 = vmatpush3.bf16.msra.mxu1 %v5074_v15 }
  0xdb   :  { %4056 = vmatprep.subr.bf16.mxu1 %v5083_v41 }
  0xde   :  { %4058 = vmatpush3.bf16.msra.mxu1 %v5094_v26 }
  0xdf   :  { %4060 = vmatprep.subr.bf16.mxu1 %v5099_v12 }
  0xe2   :  { %4062 = vmatpush3.bf16.msra.mxu1 %v5104_v63  ;;  %v1170_v63 = vld [vmem:[%s5800_s4] sm:$0xff] }
  0xe3   :  { %v1178_v27 = vcombine.high %v1170_v63, %v1170_v63  ;;  %3036 = vmatprep.subr.msk.mxu1 %vm1186_vm0, %v1181_v40  ;;  %v4122_v40 = vld [vmem:[%s5801_s5 + $0x60] ss:$8 sps:$4 sm:$0xff]  }
  0xe5   :  { %1158 = vmatmul.mubr.f32.vlgmr.msra.gmra.mrb[12].mxu1 %v872_v13  ;;  %3027 = vmatprep.subr.msk.mxu0 %vm1186_vm0, %v1178_v27  ;;  %v4091_v13 = vld [vmem:[%s5801_s5 + $0x104] ss:$8 sps:$4 sm:$0xff]   ;;  %v4121_v27 = vld [vmem:[%s5801_s5 + $0x154] ss:$8 sps:$4 sm:$0xff]  }
  0xe6   :  { %1480 = vmatprep.mubr.f32.mxu1 %v4340_v57  ;;  %3028 = vmatpush1.msk.msra.mxu0 %vm1186_vm0, %v1170_v63  ;;  %v4116_v63 = vld [vmem:[%s5801_s5 + $0x50] ss:$8 sps:$4 sm:$0xff]  }
  0xe7   :  { %3037 = vmatpush1.msk.msra.mxu1 %vm1186_vm0, %v1173_v0  ;;  %3030 = vmatprep.subr.msk.mxu0 %vm1186_vm0, %v1179_v4  ;;  %v4124_v0 = vld [vmem:[%s5801_s5 + $0x64] ss:$8 sps:$4 sm:$0xff]   ;;  %v4130_v4 = vld [vmem:[%s5801_s5 + $0x74] ss:$8 sps:$4 sm:$0xff]  }
  0xe8   :  { %2367 = vmatprep.subr.bf16.mxu1 %v4088_v2  ;;  %v4136_v2 = vld [vmem:[%s5801_s5 + $0x84] ss:$8 sps:$4 sm:$0xff]  }
  0xf8   :  { %v3228_v23 = vpop.f32.mrb[0].mxu1 }
  0xf9   :  { %v3229_v24 = vpop.f32.mrb[1].mxu1 }
  0xfa   :  { %v3230_v33 = vadd.f32 %v3229_v24, %v3228_v23 }
 0x101   :  { %v3298_v35 = vpop.f32.mrb[0].mxu0 }
 0x102   :  { %v3299_v20 = vpop.f32.mrb[1].mxu0 }
 0x103   :  { %v3300_v47 = vadd.f32 %v3299_v20, %v3298_v35  ;;  %v4089_v20 = vld [vmem:[%s5801_s5 + $0x100] ss:$8 sps:$4 sm:$0xff]  }
 0x118   :  { %v3263_v53 = vpop.f32.mrb[2].mxu1 }
 0x119   :  { %v3264_v56 = vpop.f32.mrb[3].mxu1 }
 0x11a   :  { %v3265_v45 = vadd.f32 %v3264_v56, %v3263_v53  ;;  %v4098_v53 = vld [vmem:[%s5801_s5 + $0x20] ss:$8 sps:$4 sm:$0xff]   ;;  %v4106_v56 = vld [vmem:[%s5801_s5 + $0x34] ss:$8 sps:$4 sm:$0xff]  }
 0x11c   :  { %v370_v62 = vadd.f32 %v3265_v45, %v3230_v33  ;;  %v4100_v33 = vld [vmem:[%s5801_s5 + $0x24] ss:$8 sps:$4 sm:$0xff]   ;;  %v4095_v45 = vld [vmem:[%s5801_s5 + $0x110] ss:$8 sps:$4 sm:$0xff]  }
 0x11e   :  { %v440_v6 = vadd.f32 %v3300_v47, %v370_v62  ;;  %v4097_v47 = vld [vmem:[%s5801_s5 + $0x114] ss:$8 sps:$4 sm:$0xff]   ;;  %v4103_v62 = vld [vmem:[%s5801_s5 + $0x124] ss:$8 sps:$4 sm:$0xff]  }
 0x121   :  { %v3368_v11 = vpop.f32.mrb[2].mxu0 }
 0x122   :  { %v3369_v18 = vpop.f32.mrb[3].mxu0 }
 0x123   :  { %v3370_v34 = vadd.f32 %v3369_v18, %v3368_v11  ;;  %v4112_v11 = vld [vmem:[%s5801_s5 + $0x44] ss:$8 sps:$4 sm:$0xff]   ;;  %v4101_v18 = vld [vmem:[%s5801_s5 + $0x120] ss:$8 sps:$4 sm:$0xff]  }
 0x138   :  { %v3333_v39 = vpop.f32.mrb[4].mxu1 }
 0x139   :  { %v3334_v48 = vpop.f32.mrb[5].mxu1 }
 0x13a   :  { %v3335_v51 = vadd.f32 %v3334_v48, %v3333_v39  ;;  %v4110_v39 = vld [vmem:[%s5801_s5 + $0x40] ss:$8 sps:$4 sm:$0xff]   ;;  %v4118_v48 = vld [vmem:[%s5801_s5 + $0x54] ss:$8 sps:$4 sm:$0xff]  }
 0x13c   :  { %v510_v61 = vadd.f32 %v3335_v51, %v440_v6  ;;  %v4104_v6 = vld [vmem:[%s5801_s5 + $0x30] ss:$8 sps:$4 sm:$0xff]  }
 0x13d   :  { %v4107_v51 = vld [vmem:[%s5801_s5 + $0x130] ss:$8 sps:$4 sm:$0xff]  }
 0x145   :  { %v3438_v37 = vpop.f32.mrb[4].mxu0 }
 0x146   :  { %v3439_v28 = vpop.f32.mrb[5].mxu0 }
 0x147   :  { %v3440_v50 = vadd.f32 %v3439_v28, %v3438_v37  ;;  %v4119_v37 = vld [vmem:[%s5801_s5 + $0x150] ss:$8 sps:$4 sm:$0xff]   ;;  %v4127_v28 = vld [vmem:[%s5801_s5 + $0x164] ss:$8 sps:$4 sm:$0xff]  }
 0x158   :  { %v3403_v21 = vpop.f32.mrb[6].mxu1 }
 0x159   :  { %v3404_v26 = vpop.f32.mrb[7].mxu1 }
 0x15a   :  { %v3405_v19 = vadd.f32 %v3404_v26, %v3403_v21  ;;  %v4125_v21 = vld [vmem:[%s5801_s5 + $0x160] ss:$8 sps:$4 sm:$0xff]   ;;  %v4133_v26 = vld [vmem:[%s5801_s5 + $0x174] ss:$8 sps:$4 sm:$0xff]  }
 0x15c   :  { %v696_v15 = vadd.f32 %v3405_v19, %v3370_v34  ;;  %v4109_v34 = vld [vmem:[%s5801_s5 + $0x134] ss:$8 sps:$4 sm:$0xff]   ;;  %v4134_v19 = vld [vmem:[%s5801_s5 + $0x80] ss:$8 sps:$4 sm:$0xff]  }
 0x15e   :  { %v766_v41 = vadd.f32 %v3440_v50, %v696_v15  ;;  %v4128_v50 = vld [vmem:[%s5801_s5 + $0x70] ss:$8 sps:$4 sm:$0xff]   ;;  %v4142_v15 = vld [vmem:[%s5801_s5 + $0x94] ss:$8 sps:$4 sm:$0xff]  }
 0x165   :  { %v3508_v12 = vpop.f32.mrb[6].mxu0 }
 0x166   :  { %v3509_v14 = vpop.f32.mrb[7].mxu0 }
 0x167   :  { %v3510_v3 = vadd.f32 %v3509_v14, %v3508_v12  ;;  %v4139_v12 = vld [vmem:[%s5801_s5 + $0x184] ss:$8 sps:$4 sm:$0xff]   ;;  %v4140_v14 = vld [vmem:[%s5801_s5 + $0x90] ss:$8 sps:$4 sm:$0xff]  }
 0x178   :  { %v3473_v32 = vpop.f32.mrb[8].mxu1 }
 0x179   :  { %v3474_v7 = vpop.f32.mrb[9].mxu1 }
 0x17a   :  { %v3475_v8 = vadd.f32 %v3474_v7, %v3473_v32  ;;  %v4137_v32 = vld [vmem:[%s5801_s5 + $0x180] ss:$8 sps:$4 sm:$0xff]   ;;  %v4145_v7 = vld [vmem:[%s5801_s5 + $0x194] ss:$8 sps:$4 sm:$0xff]  }
 0x17c   :  { %v836_v16 = vadd.f32 %v3475_v8, %v766_v41  ;;  %v4131_v41 = vld [vmem:[%s5801_s5 + $0x170] ss:$8 sps:$4 sm:$0xff]   ;;  %v4146_v8 = vld [vmem:[%s5801_s5 + $0xa0] ss:$8 sps:$4 sm:$0xff]  }
 0x185   :  { %v3578_v17 = vpop.f32.mrb[8].mxu0 }
 0x186   :  { %v3579_v36 = vpop.f32.mrb[9].mxu0 }
 0x187   :  { %v3580_v9 = vadd.f32 %v3579_v36, %v3578_v17  ;;  %v4151_v17 = vld [vmem:[%s5801_s5 + $0x1a4] ss:$8 sps:$4 sm:$0xff]   ;;  %v4149_v36 = vld [vmem:[%s5801_s5 + $0x1a0] ss:$8 sps:$4 sm:$0xff]  }
 0x198   :  { %v3543_v44 = vpop.f32.mrb[10].mxu1 }
 0x199   :  { %v3544_v22 = vpop.f32.mrb[11].mxu1 }
 0x19a   :  { %v3545_v43 = vadd.f32 %v3544_v22, %v3543_v44  ;;  %v4152_v44 = vld [vmem:[%s5801_s5 + $0xb0] ss:$8 sps:$4 sm:$0xff]   ;;  %v4157_v22 = vld [vmem:[%s5801_s5 + $0x1b4] ss:$8 sps:$4 sm:$0xff]  }
 0x19c   :  { %v1020_v49 = vadd.f32 %v3545_v43, %v3510_v3  ;;  %v4148_v3 = vld [vmem:[%s5801_s5 + $0xa4] ss:$8 sps:$4 sm:$0xff]   ;;  %v4155_v43 = vld [vmem:[%s5801_s5 + $0x1b0] ss:$8 sps:$4 sm:$0xff]  }
 0x19e   :  { %v1090_v55 = vadd.f32 %v3580_v9, %v1020_v49  ;;  %v4154_v9 = vld [vmem:[%s5801_s5 + $0xb4] ss:$8 sps:$4 sm:$0xff]   ;;  %v4160_v49 = vld [vmem:[%s5801_s5 + $0xc4] ss:$8 sps:$4 sm:$0xff]  }
 0x1b8   :  { %v3613_v59 = vpop.f32.mrb[12].mxu1 }
 0x1b9   :  { %v3614_v54 = vpop.f32.mrb[13].mxu1 }
 0x1ba   :  { %v3615_v1 = vadd.f32 %v3614_v54, %v3613_v59  ;;  %v4163_v59 = vld [vmem:[%s5801_s5 + $0x1c4] ss:$8 sps:$4 sm:$0xff]   ;;  %v4161_v54 = vld [vmem:[%s5801_s5 + $0x1c0] ss:$8 sps:$4 sm:$0xff]  }
 0x1bc   :  { %v1160_v5 = vadd.f32 %v3615_v1, %v1090_v55  ;;  %v4158_v55 = vld [vmem:[%s5801_s5 + $0xc0] ss:$8 sps:$4 sm:$0xff]   ;;  %v4166_v1 = vld [vmem:[%s5801_s5 + $0xd4] ss:$8 sps:$4 sm:$0xff]  }
 0x1be   :  { %4298 = vrcp.f32 %v1160_v5  ;;  %v3026_v38 = vadd.f32 -1.0, %v1160_v5  ;;  %v4164_v5 = vld [vmem:[%s5801_s5 + $0xd0] ss:$8 sps:$4 sm:$0xff]  }
 0x1c0   :  { %4300 = vrcp.f32 %v3026_v38  ;;  %v4169_v38 = vld [vmem:[%s5801_s5 + $0x1d4] ss:$8 sps:$4 sm:$0xff]  }
 0x1c8   :  { %v4299_v42 = vpop.eup %4298 }
 0x1c9   :  { %v1164_v60 = vmul.f32 %v4299_v42, %v510_v61  ;;  %v4172_v42 = vld [vmem:[%s5801_s5 + $0xe4] ss:$8 sps:$4 sm:$0xff]  }
 0x1ca   :  { %v4301_v24 = vpop.eup %4300 }
 0x1cb   :  { %3029 = vmatmul.mubr.msk.f32.vlgmr.msra.gmra.mrb[10].mxu0 %vm1182_vm1, %v1164_v60  ;;  %3038 = vmatmul.mubr.msk.f32.vlgmr.msra.gmra.mrb[14].mxu1 %vm1182_vm1, %v1164_v60  ;;  %v1165_v10 = vmul.f32 %v1164_v60, %v510_v61  ;;  %v4115_v61 = vld [vmem:[%s5801_s5 + $0x144] ss:$8 sps:$4 sm:$0xff]  }
 0x1cc   :  { %3031 = vmatpush1.msk.msra.mxu0 %vm1186_vm0, %v1171_v30  ;;  %1338 = vmatprep.mubr.f32.mxu0 %v4340_v57  ;;  %v4113_v30 = vld [vmem:[%s5801_s5 + $0x140] ss:$8 sps:$4 sm:$0xff]  }
 0x1cd   :  { %3033 = vmatprep.subr.msk.mxu0 %vm1186_vm0, %v1180_v25  ;;  %2368 = vmatpush1.bf16.msra.mxu1 %v4086_v46  ;;  %v1166_v23 = vsub.f32 %v836_v16, %v1165_v10  ;;  %v4143_v16 = vld [vmem:[%s5801_s5 + $0x190] ss:$8 sps:$4 sm:$0xff]   ;;  %v4175_v25 = vld [vmem:[%s5801_s5 + $0x1e4] ss:$8 sps:$4 sm:$0xff]   ;;  %v4173_v46 = vld [vmem:[%s5801_s5 + $0x1e0] ss:$8 sps:$4 sm:$0xff]  }
 0x1ce   :  { %2369 = vmatprep.subr.bf16.mxu1 %v4094_v52  ;;  %v4178_v52 = vld [vmem:[%s5801_s5 + $0xf4] ss:$8 sps:$4 sm:$0xff]   ;;  %v4176_v10 = vld [vmem:[%s5801_s5 + $0xf0] ss:$8 sps:$4 sm:$0xff]  }
 0x1cf   :  { %3032 = vmatmul.mubr.msk.f32.vlgmr.msra.gmra.mrb[12].mxu0 %vm1182_vm1, %v1164_v60  ;;  %v5273_v35 = vmul.f32 %v4301_v24, %v1166_v23  ;;  %v4184_v23 = vld [vmem:[%s5801_s5 + $0x204] ss:$8 sps:$4 sm:$0xff]  }
 0x1d0   :  { %3034 = vmatpush1.msk.msra.mxu0 %vm1186_vm0, %v1172_v58  ;;  %1409 = vmatprep.mubr.f32.mxu0 %v4340_v57  ;;  %v4167_v58 = vld [vmem:[%s5801_s5 + $0x1d0] ss:$8 sps:$4 sm:$0xff]  }
 0x1d1   :  { %2408 = vmatprep.subr.bf16.mxu0 %v4091_v13  ;;  %2370 = vmatpush1.bf16.msra.mxu1 %v4092_v29  ;;  %v4179_v13 = vld [vmem:[%s5801_s5 + $0x1f0] ss:$8 sps:$4 sm:$0xff]   ;;  %v4181_v29 = vld [vmem:[%s5801_s5 + $0x1f4] ss:$8 sps:$4 sm:$0xff]  }
 0x1d2   :  { %2371 = vmatprep.subr.bf16.mxu1 %v4100_v33 }
 0x1d3   :  { %3035 = vmatmul.mubr.msk.f32.vlgmr.msra.gmra.mrb[14].mxu0 %vm1182_vm1, %v1164_v60  ;;  %v4170_v60 = vld [vmem:[%s5801_s5 + $0xe0] ss:$8 sps:$4 sm:$0xff]  }
 0x1d4   :  { %2409 = vmatpush1.bf16.msra.mxu0 %v4089_v20 }
 0x1d5   :  { %2410 = vmatprep.subr.bf16.mxu0 %v4097_v47  ;;  %2372 = vmatpush1.bf16.msra.mxu1 %v4098_v53 }
 0x1d6   :  { %2373 = vmatprep.subr.bf16.mxu1 %v4106_v56 }
 0x1d8   :  { %2411 = vmatpush1.bf16.msra.mxu0 %v4095_v45 }
 0x1d9   :  { %2412 = vmatprep.subr.bf16.mxu0 %v4103_v62  ;;  %2374 = vmatpush1.bf16.msra.mxu1 %v4104_v6 }
 0x1da   :  { %2375 = vmatprep.subr.bf16.mxu1 %v4112_v11 }
 0x1dc   :  { %2413 = vmatpush1.bf16.msra.mxu0 %v4101_v18 }
 0x1dd   :  { %2414 = vmatprep.subr.bf16.mxu0 %v4109_v34  ;;  %2376 = vmatpush1.bf16.msra.mxu1 %v4110_v39  ;;  %v1487_v39 = vld [vmem:[%s5869_s29] sm:$0xff] }
 0x1de   :  { %2377 = vmatprep.subr.bf16.mxu1 %v4118_v48 }
 0x1e0   :  { %2415 = vmatpush1.bf16.msra.mxu0 %v4107_v51 }
 0x1e1   :  { %2416 = vmatprep.subr.bf16.mxu0 %v4115_v61  ;;  %2378 = vmatpush1.bf16.msra.mxu1 %v4116_v63 }
 0x1e2   :  { %2379 = vmatprep.subr.bf16.mxu1 %v4124_v0 }
 0x1e4   :  { %2417 = vmatpush1.bf16.msra.mxu0 %v4113_v30 }
 0x1e5   :  { %2418 = vmatprep.subr.bf16.mxu0 %v4121_v27  ;;  %2380 = vmatpush1.bf16.msra.mxu1 %v4122_v40  ;;  %v1488_v27 = vld [vmem:[%s5869_s29 + $0x8] sm:$0xff] }
 0x1e6   :  { %2381 = vmatprep.subr.bf16.mxu1 %v4130_v4 }
 0x1e8   :  { %2419 = vmatpush1.bf16.msra.mxu0 %v4119_v37 }
 0x1e9   :  { %2420 = vmatprep.subr.bf16.mxu0 %v4127_v28  ;;  %2382 = vmatpush1.bf16.msra.mxu1 %v4128_v50 }
 0x1ea   :  { %2383 = vmatprep.subr.bf16.mxu1 %v4136_v2 }
 0x1ec   :  { %2421 = vmatpush1.bf16.msra.mxu0 %v4125_v21 }
 0x1ed   :  { %2422 = vmatprep.subr.bf16.mxu0 %v4133_v26  ;;  %2384 = vmatpush1.bf16.msra.mxu1 %v4134_v19 }
 0x1ee   :  { %2385 = vmatprep.subr.bf16.mxu1 %v4142_v15 }
 0x1f0   :  { %2423 = vmatpush1.bf16.msra.mxu0 %v4131_v41 }
 0x1f1   :  { %2424 = vmatprep.subr.bf16.mxu0 %v4139_v12  ;;  %2386 = vmatpush1.bf16.msra.mxu1 %v4140_v14  ;;  %v4182_v12 = vld [vmem:[%s5801_s5 + $0x200] ss:$8 sps:$4 sm:$0xff]  }
 0x1f2   :  { %2387 = vmatprep.subr.bf16.mxu1 %v4148_v3 }
 0x1f4   :  { %2425 = vmatpush1.bf16.msra.mxu0 %v4137_v32  ;;  %v4187_v32 = vld [vmem:[%s5801_s5 + $0x214] ss:$8 sps:$4 sm:$0xff]  }
 0x1f5   :  { %2426 = vmatprep.subr.bf16.mxu0 %v4145_v7  ;;  %2388 = vmatpush1.bf16.msra.mxu1 %v4146_v8  ;;  %v4185_v8 = vld [vmem:[%s5801_s5 + $0x210] ss:$8 sps:$4 sm:$0xff]  }
 0x1f6   :  { %2389 = vmatprep.subr.bf16.mxu1 %v4154_v9  ;;  %v4191_v9 = vld [vmem:[%s5801_s5 + $0x230] ss:$8 sps:$4 sm:$0xff]  }
 0x1f8   :  { %2427 = vmatpush1.bf16.msra.mxu0 %v4143_v16  ;;  %v4190_v16 = vld [vmem:[%s5801_s5 + $0x224] ss:$8 sps:$4 sm:$0xff]  }
 0x1f9   :  { %2428 = vmatprep.subr.bf16.mxu0 %v4151_v17  ;;  %2390 = vmatpush1.bf16.msra.mxu1 %v4152_v44  ;;  %v4188_v17 = vld [vmem:[%s5801_s5 + $0x220] ss:$8 sps:$4 sm:$0xff]   ;;  %v4196_v44 = vld [vmem:[%s5801_s5 + $0x244] ss:$8 sps:$4 sm:$0xff]  }
 0x1fa   :  { %2391 = vmatprep.subr.bf16.mxu1 %v4160_v49  ;;  %v4197_v49 = vld [vmem:[%s5801_s5 + $0x250] ss:$8 sps:$4 sm:$0xff]  }
 0x1fc   :  { %2429 = vmatpush1.bf16.msra.mxu0 %v4149_v36  ;;  %v4193_v36 = vld [vmem:[%s5801_s5 + $0x234] ss:$8 sps:$4 sm:$0xff]  }
 0x1fd   :  { %2430 = vmatprep.subr.bf16.mxu0 %v4157_v22  ;;  %2392 = vmatpush1.bf16.msra.mxu1 %v4158_v55  ;;  %v4194_v22 = vld [vmem:[%s5801_s5 + $0x240] ss:$8 sps:$4 sm:$0xff]   ;;  %v4202_v55 = vld [vmem:[%s5801_s5 + $0x264] ss:$8 sps:$4 sm:$0xff]  }
 0x1fe   :  { %2393 = vmatprep.subr.bf16.mxu1 %v4166_v1  ;;  %v4203_v1 = vld [vmem:[%s5801_s5 + $0x270] ss:$8 sps:$4 sm:$0xff]  }
 0x200   :  { %2431 = vmatpush1.bf16.msra.mxu0 %v4155_v43  ;;  %v4199_v43 = vld [vmem:[%s5801_s5 + $0x254] ss:$8 sps:$4 sm:$0xff]  }
 0x201   :  { %2432 = vmatprep.subr.bf16.mxu0 %v4163_v59  ;;  %2394 = vmatpush1.bf16.msra.mxu1 %v4164_v5  ;;  %v4200_v59 = vld [vmem:[%s5801_s5 + $0x260] ss:$8 sps:$4 sm:$0xff]   ;;  %v4208_v5 = vld [vmem:[%s5801_s5 + $0x284] ss:$8 sps:$4 sm:$0xff]  }
 0x202   :  { %2395 = vmatprep.subr.bf16.mxu1 %v4172_v42  ;;  %v4209_v42 = vld [vmem:[%s5801_s5 + $0x290] ss:$8 sps:$4 sm:$0xff]  }
 0x204   :  { %2433 = vmatpush1.bf16.msra.mxu0 %v4161_v54  ;;  %v4205_v54 = vld [vmem:[%s5801_s5 + $0x274] ss:$8 sps:$4 sm:$0xff]  }
 0x205   :  { %2434 = vmatprep.subr.bf16.mxu0 %v4169_v38  ;;  %2396 = vmatpush1.bf16.msra.mxu1 %v4170_v60  ;;  %v4206_v38 = vld [vmem:[%s5801_s5 + $0x280] ss:$8 sps:$4 sm:$0xff]   ;;  %v4214_v60 = vld [vmem:[%s5801_s5 + $0x2a4] ss:$8 sps:$4 sm:$0xff]  }
 0x206   :  { %2397 = vmatprep.subr.bf16.mxu1 %v4178_v52  ;;  %v4215_v52 = vld [vmem:[%s5801_s5 + $0x2b0] ss:$8 sps:$4 sm:$0xff]  }
 0x208   :  { %2435 = vmatpush1.bf16.msra.mxu0 %v4167_v58  ;;  %v4211_v58 = vld [vmem:[%s5801_s5 + $0x294] ss:$8 sps:$4 sm:$0xff]  }
 0x209   :  { %2436 = vmatprep.subr.bf16.mxu0 %v4175_v25  ;;  %2398 = vmatpush1.bf16.msra.mxu1 %v4176_v10  ;;  %v4212_v25 = vld [vmem:[%s5801_s5 + $0x2a0] ss:$8 sps:$4 sm:$0xff]   ;;  %v4220_v10 = vld [vmem:[%s5801_s5 + $0x2c4] ss:$8 sps:$4 sm:$0xff]  }
 0x20c   :  { %2437 = vmatpush1.bf16.msra.mxu0 %v4173_v46  ;;  %v4217_v46 = vld [vmem:[%s5801_s5 + $0x2b4] ss:$8 sps:$4 sm:$0xff]  }
 0x20d   :  { %2438 = vmatprep.subr.bf16.mxu0 %v4181_v29  ;;  %v4223_v29 = vld [vmem:[%s5801_s5 + $0x2d4] ss:$8 sps:$4 sm:$0xff]  }
 0x210   :  { %2439 = vmatpush1.bf16.msra.mxu0 %v4179_v13  ;;  %v4218_v13 = vld [vmem:[%s5801_s5 + $0x2c0] ss:$8 sps:$4 sm:$0xff]  }
 0x211   :  { %2449 = vmatprep.subr.bf16.mxu0 %v4184_v23  ;;  %v4221_v23 = vld [vmem:[%s5801_s5 + $0x2d0] ss:$8 sps:$4 sm:$0xff]  }
 0x29e   :  { %v1269_v24 = vpop.f32.mrb[10].mxu0  ;;  %v1482_v33 = vpop.f32.mrb[14].mxu1 }
 0x29f   :  { %v1271_v20 = vpop.f32.mrb[11].mxu0  ;;  %v1484_v47 = vpop.f32.mrb[15].mxu1 }
 0x2a0   :  { %v1497_v53 = vcombine.low %v1269_v24, %v1271_v20  ;;  %v1515_v56 = vcombine.low %v1482_v33, %v1484_v47  ;;  %v4226_v24 = vld [vmem:[%s5801_s5 + $0x2e4] ss:$8 sps:$4 sm:$0xff]   ;;  %v4224_v20 = vld [vmem:[%s5801_s5 + $0x2e0] ss:$8 sps:$4 sm:$0xff]   ;;  %v4229_v47 = vld [vmem:[%s5801_s5 + $0x2f4] ss:$8 sps:$4 sm:$0xff]  }
 0x2a2   :  { %v1340_v45 = vpop.f32.mrb[12].mxu0  ;;  %v1505_v11 = vrot.slane %v1497_v53, %v4510_v31  ;;  %v1529_v63 = vrot.slane %v1515_v56, %v4510_v31  ;;  %v4227_v56 = vld [vmem:[%s5801_s5 + $0x2f0] ss:$8 sps:$4 sm:$0xff]  }
 0x2a3   :  { %v1342_v62 = vpop.f32.mrb[13].mxu0 }
 0x2a4   :  { %v1498_v6 = vcombine.low %v1340_v45, %v1342_v62  ;;  %v4232_v45 = vld [vmem:[%s5801_s5 + $0x304] ss:$8 sps:$4 sm:$0xff]  }
 0x2a6   :  { %v1512_v18 = vrot.slane %v1498_v6, %v4510_v31  ;;  %v1411_v34 = vpop.f32.mrb[14].mxu0  ;;  %v4230_v6 = vld [vmem:[%s5801_s5 + $0x300] ss:$8 sps:$4 sm:$0xff]  }
 0x2a7   :  { %v1413_v48 = vpop.f32.mrb[15].mxu0 }
 0x2a8   :  { %v1513_v51 = vcombine.low %v1505_v11, %v1512_v18  ;;  %v1514_v61 = vcombine.low %v1411_v34, %v1413_v48  ;;  %v4235_v11 = vld [vmem:[%s5801_s5 + $0x314] ss:$8 sps:$4 sm:$0xff]   ;;  %v4233_v34 = vld [vmem:[%s5801_s5 + $0x310] ss:$8 sps:$4 sm:$0xff]   ;;  %v4236_v48 = vld [vmem:[%s5801_s5 + $0x320] ss:$8 sps:$4 sm:$0xff]  }
 0x2aa   :  { %v1533_v0 = vsub.f32 %v1487_v39, %v1513_v51  ;;  %v1522_v30 = vrot.slane %v1514_v61, %v4510_v31  ;;  %v4238_v39 = vld [vmem:[%s5801_s5 + $0x324] ss:$8 sps:$4 sm:$0xff]   ;;  %v4241_v51 = vld [vmem:[%s5801_s5 + $0x334] ss:$8 sps:$4 sm:$0xff]   ;;  %v4239_v61 = vld [vmem:[%s5801_s5 + $0x330] ss:$8 sps:$4 sm:$0xff]  }
 0x2ac   :  { %v1530_v40 = vcombine.low %v1522_v30, %v1529_v63  ;;  %v1544_v4 = vrot.slane %v1533_v0, %v4510_v31  ;;  %v1537_v37 = vcombine.high %v1533_v0, %v1533_v0  ;;  %v4244_v63 = vld [vmem:[%s5801_s5 + $0x344] ss:$8 sps:$4 sm:$0xff]   ;;  %v4242_v0 = vld [vmem:[%s5801_s5 + $0x340] ss:$8 sps:$4 sm:$0xff]   ;;  %v4247_v30 = vld [vmem:[%s5801_s5 + $0x354] ss:$8 sps:$4 sm:$0xff]  }
 0x2ae   :  { %v5466_v28 = vsub.f32 %v1488_v27, %v1530_v40  ;;  %v1552_v50 = vcombine.high %v1544_v4, %v1544_v4  ;;  %v1551_v2 = vrot.slane %v1537_v37, %v4510_v31  ;;  %v1579_v15 = vpack.c.bf16 %v1544_v4, %v1544_v4  ;;  %v4245_v27 = vld [vmem:[%s5801_s5 + $0x350] ss:$8 sps:$4 sm:$0xff]   ;;  %v4250_v40 = vld [vmem:[%s5801_s5 + $0x364] ss:$8 sps:$4 sm:$0xff]  }
 0x2af   :  { %v4278_v4 = vld [vmem:[%s5803_s7 + $0x40] sm:$0xff]  }
 0x2b0   :  { %v1580_v21 = vpack.c.bf16 %v1552_v50, %v1552_v50  ;;  %v1553_v26 = vcombine.high %v1551_v2, %v1551_v2  ;;  %v5471_v19 = vrot.slane %v5466_v28, %v4510_v31  ;;  %v1581_v3 = vpack.c.bf16 %v1551_v2, %v1551_v2  ;;  %v4279_v37 = vld [vmem:[%s5803_s7] sm:$0xff]   ;;  %v4253_v2 = vld [vmem:[%s5801_s5 + $0x374] ss:$8 sps:$4 sm:$0xff]   ;;  %3616 = vmatprep.subr.bf16.mxu1 %v4278_v4 }
 0x2b1   :  { %v1554_v33 = vcombine.high %v5466_v28, %v5466_v28  ;;  %v4280_v28 = vld [vmem:[%s5803_s7 + $0x48] sm:$0xff]  }
 0x2b2   :  { %2399 = vmatprep.mubr.bf16.mxu1 %v1580_v21  ;;  %v1582_v41 = vpack.c.bf16 %v1553_v26, %v1553_v26  ;;  %v1569_v14 = vcombine.high %v5471_v19, %v5471_v19  ;;  %v4248_v50 = vld [vmem:[%s5801_s5 + $0x360] ss:$8 sps:$4 sm:$0xff]   ;;  %v4282_v26 = vld [vmem:[%s5803_s7 + $0x50] sm:$0xff]  }
 0x2b3   :  { %2400 = vmatmul.mubr.bf16.vlgmr.msra.gmra.mrb[16].mxu1 %v1579_v15  ;;  %v5568_v53 = vrot.slane %v1554_v33, %v4510_v31  ;;  %v1583_v31 = vpack.c.bf16 %v5471_v19, %v5471_v19  ;;  %v4281_v21 = vld [vmem:[%s5803_s7 + $0x8] sm:$0xff]   ;;  %v4251_v19 = vld [vmem:[%s5801_s5 + $0x370] ss:$8 sps:$4 sm:$0xff]  }
 0x2b4   :  { %2440 = vmatprep.mubr.bf16.mxu0 %v1582_v41  ;;  %v1584_v7 = vpack.c.bf16 %v1569_v14, %v1569_v14  ;;  %3617 = vmatpush3.bf16.msra.mxu1 %v4279_v37  ;;  %v4256_v15 = vld [vmem:[%s5801_s5 + $0x384] ss:$8 sps:$4 sm:$0xff]   ;;  %v4283_v41 = vld [vmem:[%s5803_s7 + $0x10] sm:$0xff]   ;;  %v4254_v14 = vld [vmem:[%s5801_s5 + $0x380] ss:$8 sps:$4 sm:$0xff]  }
 0x2b5   :  { %2441 = vmatmul.mubr.bf16.vlgmr.msra.gmra.mrb[16].mxu0 %v1581_v3  ;;  %v1570_v62 = vcombine.high %v5568_v53, %v5568_v53  ;;  %3618 = vmatprep.subr.bf16.mxu1 %v4280_v28  ;;  %v4259_v3 = vld [vmem:[%s5801_s5 + $0x394] ss:$8 sps:$4 sm:$0xff]   ;;  %v3167_v37 = vld [vmem:[%s5804_s8] ss:$0 sm:$0xff] }
 0x2b6   :  { %2450 = vmatpush1.bf16.msra.mxu0 %v4182_v12  ;;  %2481 = vmatprep.mubr.bf16.mxu0 %v1584_v7  ;;  %v4284_v12 = vld [vmem:[%s5803_s7 + $0x58] sm:$0xff]   ;;  %v4286_v7 = vld [vmem:[%s5803_s7 + $0x60] sm:$0xff]  }
 0x2b7   :  { %2451 = vmatprep.subr.bf16.mxu0 %v4187_v32  ;;  %v1586_v18 = vpack.c.bf16 %v1570_v62, %v1570_v62  ;;  %v4285_v32 = vld [vmem:[%s5803_s7 + $0x18] sm:$0xff]  }
 0x2b8   :  { %3619 = vmatpush3.bf16.msra.mxu1 %v4281_v21 }
 0x2b9   :  { %3620 = vmatprep.subr.bf16.mxu1 %v4282_v26 }
 0x2ba   :  { %2452 = vmatpush1.bf16.msra.mxu0 %v4185_v8  ;;  %v4257_v8 = vld [vmem:[%s5801_s5 + $0x390] ss:$8 sps:$4 sm:$0xff]  }
 0x2bb   :  { %2453 = vmatprep.subr.bf16.mxu0 %v4190_v16  ;;  %v4262_v16 = vld [vmem:[%s5801_s5 + $0x3a4] ss:$8 sps:$4 sm:$0xff]  }
 0x2bc   :  { %3621 = vmatpush3.bf16.msra.mxu1 %v4283_v41 }
 0x2bd   :  { %3622 = vmatprep.subr.bf16.mxu1 %v4284_v12 }
 0x2be   :  { %2454 = vmatpush1.bf16.msra.mxu0 %v4188_v17  ;;  %v4287_v17 = vld [vmem:[%s5803_s7 + $0x20] sm:$0xff]  }
 0x2bf   :  { %2455 = vmatprep.subr.bf16.mxu0 %v4193_v36  ;;  %v4288_v36 = vld [vmem:[%s5803_s7 + $0x68] sm:$0xff]  }
 0x2c0   :  { %3623 = vmatpush3.bf16.msra.mxu1 %v4285_v32 }
 0x2c1   :  { %3624 = vmatprep.subr.bf16.mxu1 %v4286_v7 }
 0x2c2   :  { %2456 = vmatpush1.bf16.msra.mxu0 %v4191_v9  ;;  %v4260_v9 = vld [vmem:[%s5801_s5 + $0x3a0] ss:$8 sps:$4 sm:$0xff]  }
 0x2c3   :  { %2457 = vmatprep.subr.bf16.mxu0 %v4196_v44  ;;  %v4265_v44 = vld [vmem:[%s5801_s5 + $0x3b4] ss:$8 sps:$4 sm:$0xff]  }
 0x2c4   :  { %3625 = vmatpush3.bf16.msra.mxu1 %v4287_v17 }
 0x2c5   :  { %3626 = vmatprep.subr.bf16.mxu1 %v4288_v36 }
 0x2c6   :  { %2458 = vmatpush1.bf16.msra.mxu0 %v4194_v22  ;;  %v4289_v22 = vld [vmem:[%s5803_s7 + $0x28] sm:$0xff]  }
 0x2c7   :  { %2459 = vmatprep.subr.bf16.mxu0 %v4199_v43  ;;  %v4290_v43 = vld [vmem:[%s5803_s7 + $0x70] sm:$0xff]  }
 0x2c8   :  { %3627 = vmatpush3.bf16.msra.mxu1 %v4289_v22 }
 0x2c9   :  { %3628 = vmatprep.subr.bf16.mxu1 %v4290_v43 }
 0x2ca   :  { %2460 = vmatpush1.bf16.msra.mxu0 %v4197_v49  ;;  %v4263_v49 = vld [vmem:[%s5801_s5 + $0x3b0] ss:$8 sps:$4 sm:$0xff]  }
 0x2cb   :  { %2461 = vmatprep.subr.bf16.mxu0 %v4202_v55  ;;  %v4268_v55 = vld [vmem:[%s5801_s5 + $0x3c4] ss:$8 sps:$4 sm:$0xff]  }
 0x2ce   :  { %2462 = vmatpush1.bf16.msra.mxu0 %v4200_v59  ;;  %v4266_v59 = vld [vmem:[%s5801_s5 + $0x3c0] ss:$8 sps:$4 sm:$0xff]  }
 0x2cf   :  { %2463 = vmatprep.subr.bf16.mxu0 %v4205_v54  ;;  %v4271_v54 = vld [vmem:[%s5801_s5 + $0x3d4] ss:$8 sps:$4 sm:$0xff]  }
 0x2d2   :  { %2464 = vmatpush1.bf16.msra.mxu0 %v4203_v1  ;;  %v4269_v1 = vld [vmem:[%s5801_s5 + $0x3d0] ss:$8 sps:$4 sm:$0xff]  }
 0x2d3   :  { %2465 = vmatprep.subr.bf16.mxu0 %v4208_v5  ;;  %v4274_v5 = vld [vmem:[%s5801_s5 + $0x3e4] ss:$8 sps:$4 sm:$0xff]  }
 0x2d6   :  { %2466 = vmatpush1.bf16.msra.mxu0 %v4206_v38  ;;  %v4272_v38 = vld [vmem:[%s5801_s5 + $0x3e0] ss:$8 sps:$4 sm:$0xff]  }
 0x2d7   :  { %2467 = vmatprep.subr.bf16.mxu0 %v4211_v58  ;;  %v4277_v58 = vld [vmem:[%s5801_s5 + $0x3f4] ss:$8 sps:$4 sm:$0xff]  }
 0x2da   :  { %2468 = vmatpush1.bf16.msra.mxu0 %v4209_v42  ;;  %v4275_v42 = vld [vmem:[%s5801_s5 + $0x3f0] ss:$8 sps:$4 sm:$0xff]  }
 0x2db   :  { %2469 = vmatprep.subr.bf16.mxu0 %v4214_v60  ;;  %v1585_v60 = vpack.c.bf16 %v5568_v53, %v5568_v53 }
 0x2de   :  { %2470 = vmatpush1.bf16.msra.mxu0 %v4212_v25 }
 0x2df   :  { %2471 = vmatprep.subr.bf16.mxu0 %v4217_v46  ;;  %v4291_v46 = vld [vmem:[%s5803_s7 + $0x30] sm:$0xff]  }
 0x2e0   :  { %3629 = vmatpush3.bf16.msra.mxu1 %v4291_v46 }
 0x2e2   :  { %2472 = vmatpush1.bf16.msra.mxu0 %v4215_v52 }
 0x2e3   :  { %2473 = vmatprep.subr.bf16.mxu0 %v4220_v10 }
 0x2e6   :  { %2474 = vmatpush1.bf16.msra.mxu0 %v4218_v13 }
 0x2e7   :  { %2475 = vmatprep.subr.bf16.mxu0 %v4223_v29  ;;  %v4292_v29 = vld [vmem:[%s5803_s7 + $0x78] sm:$0xff]  }
 0x2e8   :  { %3630 = vmatprep.subr.bf16.mxu1 %v4292_v29 }
 0x2ea   :  { %2476 = vmatpush1.bf16.msra.mxu0 %v4221_v23  ;;  %v4293_v23 = vld [vmem:[%s5803_s7 + $0x38] sm:$0xff]  }
 0x2eb   :  { %2477 = vmatprep.subr.bf16.mxu0 %v4226_v24  ;;  %3631 = vmatpush3.bf16.msra.mxu1 %v4293_v23  ;;  %v5870_v24 = vld [vmem:[#allocation5_spill] sm:$0xff] }
 0x2ec   :  { %3649 = vmatprep.subr.bf16.mxu1 %v4340_v57  ;;  %v1719_v33 = vsub.s32 0, %v5870_v24 }
 0x2ee   :  { %2478 = vmatpush1.bf16.msra.mxu0 %v4224_v20  ;;  %v1715_v20 = vld [vmem:[%s5802_s6] sm:$0x3] }
 0x2ef   :  { %2479 = vmatprep.subr.bf16.mxu0 %v4229_v47  ;;  %v1723_v47 = vsub.s32 1, %v5870_v24  ;;  %v1720_v53 = vrot.slane %v1715_v20, %v1719_v33  ;;  %v4342_v33 = vmov -1.0  }
 0x2f2   :  { %2480 = vmatpush1.bf16.msra.mxu0 %v4227_v56  ;;  %v1724_v56 = vrot.slane %v1715_v20, %v1723_v47 }
 0x2f3   :  { %2490 = vmatprep.subr.bf16.mxu0 %v4232_v45 }
 0x2f5   :  { %2482 = vmatmul.mubr.bf16.vlgmr.msra.gmra.mrb[16].mxu0 %v1583_v31 }
 0x2f6   :  { %2491 = vmatpush1.bf16.msra.mxu0 %v4230_v6  ;;  %2522 = vmatprep.mubr.bf16.mxu0 %v1586_v18 }
 0x2f7   :  { %2492 = vmatprep.subr.bf16.mxu0 %v4235_v11 }
 0x2fa   :  { %2493 = vmatpush1.bf16.msra.mxu0 %v4233_v34 }
 0x2fb   :  { %2494 = vmatprep.subr.bf16.mxu0 %v4238_v39  ;;  %v2718_v39 = vld [vmem:[%s5806_s10] sm:$0x3] }
 0x2fe   :  { %2495 = vmatpush1.bf16.msra.mxu0 %v4236_v48 }
 0x2ff   :  { %2496 = vmatprep.subr.bf16.mxu0 %v4241_v51 }
 0x302   :  { %2497 = vmatpush1.bf16.msra.mxu0 %v4239_v61 }
 0x303   :  { %2498 = vmatprep.subr.bf16.mxu0 %v4244_v63  ;;  %v2724_v63 = vsel %vm2722_vm2, %v2718_v39, 0 }
 0x306   :  { %2499 = vmatpush1.bf16.msra.mxu0 %v4242_v0  ;;  %v4294_v0 = vld [vmem:[%s5805_s9] sm:$0xff]  }
 0x307   :  { %2500 = vmatprep.subr.bf16.mxu0 %v4247_v30  ;;  %v2717_v30 = vpack.c.bf16 %v5273_v35, %v5273_v35  ;;  %v4297_v35 = vld [vmem:[%s5805_s9 + $0x18] sm:$0xff]  }
 0x30a   :  { %2501 = vmatpush1.bf16.msra.mxu0 %v4245_v27  ;;  %v4295_v27 = vld [vmem:[%s5805_s9 + $0x8] sm:$0xff]  }
 0x30b   :  { %2502 = vmatprep.subr.bf16.mxu0 %v4250_v40  ;;  %v4296_v40 = vld [vmem:[%s5805_s9 + $0x10] sm:$0xff]  }
 0x30e   :  { %2503 = vmatpush1.bf16.msra.mxu0 %v4248_v50 }
 0x30f   :  { %2504 = vmatprep.subr.bf16.mxu0 %v4253_v2 }
 0x312   :  { %2505 = vmatpush1.bf16.msra.mxu0 %v4251_v19 }
 0x313   :  { %2506 = vmatprep.subr.bf16.mxu0 %v4256_v15 }
 0x316   :  { %2507 = vmatpush1.bf16.msra.mxu0 %v4254_v14 }
 0x317   :  { %2508 = vmatprep.subr.bf16.mxu0 %v4259_v3  ;;  %v2869_v3 = vld [vmem:[%s5808_s12] sm:$0x3] }
 0x318   :  { %v2881_v32 = vsel %vm2722_vm2, %v2869_v3, 0 }
 0x31a   :  { %2509 = vmatpush1.bf16.msra.mxu0 %v4257_v8  ;;  %v3190_v8 = vld [vmem:[%s5807_s11] ss:$0 sm:$0xff] }
 0x31b   :  { %2510 = vmatprep.subr.bf16.mxu0 %v4262_v16 }
 0x31e   :  { %2511 = vmatpush1.bf16.msra.mxu0 %v4260_v9 }
 0x31f   :  { %2512 = vmatprep.subr.bf16.mxu0 %v4265_v44 }
 0x322   :  { %2513 = vmatpush1.bf16.msra.mxu0 %v4263_v49 }
 0x323   :  { %2514 = vmatprep.subr.bf16.mxu0 %v4268_v55 }
 0x326   :  { %2515 = vmatpush1.bf16.msra.mxu0 %v4266_v59 }
 0x327   :  { %2516 = vmatprep.subr.bf16.mxu0 %v4271_v54 }
 0x32a   :  { %2517 = vmatpush1.bf16.msra.mxu0 %v4269_v1 }
 0x32b   :  { %2518 = vmatprep.subr.bf16.mxu0 %v4274_v5 }
 0x32e   :  { %2519 = vmatpush1.bf16.msra.mxu0 %v4272_v38 }
 0x32f   :  { %2520 = vmatprep.subr.bf16.mxu0 %v4277_v58 }
 0x332   :  { %2521 = vmatpush1.bf16.msra.mxu0 %v4275_v42 }
 0x335   :  { %2523 = vmatmul.mubr.bf16.vlgmr.msra.gmra.mrb[16].mxu0 %v1585_v60 }
 0x386   :  { %v2401_v25 = vpop.f32.mrb[16].mxu1 }
 0x387   :  { %v2403_v52 = vpop.f32.mrb[17].mxu1  ;;  %v2402_v45 = vadd.f32 %v2401_v25, %v1720_v53 }
 0x388   :  { %v2405_v10 = vpop.f32.mrb[18].mxu1  ;;  %v2404_v62 = vadd.f32 %v2403_v52, %v1724_v56 }
 0x389   :  { %v2406_v13 = vpop.f32.mrb[19].mxu1 }
 0x408   :  { %v2524_v6 = vpop.f32.mrb[16].mxu0 }
 0x409   :  { %v4064_v31 = vadd.f32 %v2524_v6, %v2402_v45  ;;  %v2526_v11 = vpop.f32.mrb[17].mxu0  ;;  %v2950_v6 = vld [vmem:[%s5810_s14] sm:$0x3] }
 0x40a   :  { %v4066_v18 = vadd.f32 %v2526_v11, %v2404_v62  ;;  %v2528_v34 = vpop.f32.mrb[18].mxu0  ;;  %v3191_v11 = vld [vmem:[%s5809_s13] ss:$0 sm:$0xff] }
 0x40b   :  { %v2529_v48 = vpop.f32.mrb[19].mxu0  ;;  %v2531_v61 = vpack.c.bf16 %v4064_v31, %v4064_v31  ;;  %v2962_v31 = vsel %vm2722_vm2, %v2950_v6, 0 }
 0x40c   :  { %v2532_v51 = vpack.c.bf16 %v4066_v18, %v4066_v18 }
 0x40e   :  { %2700 = vmatprep.mubr.bf16.mxu1 %v2532_v51 }
 0x40f   :  { %2701 = vmatmul.mubr.bf16.vlgmr.msra.gmra.mrb[20].mxu1 %v2531_v61 }
 0x410   :  { %3650 = vmatpush3.bf16.msra.mxu1 %v2724_v63  ;;  %3651 = vmatprep.mubr.msk.bf16.mxu1 %vm4341_vm3, %v4340_v57 }
 0x411   :  { %3655 = vmatprep.subr.bf16.mxu1 %v4340_v57 }
 0x417   :  { %3652 = vmatmul.mubr.msk.bf16.vlgmr.msra.gmra.mrb[24].mxu1 %vm1182_vm1, %v2717_v30 }
 0x418   :  { %3656 = vmatpush3.bf16.msra.mxu1 %v4294_v0  ;;  %3663 = vmatprep.mubr.msk.bf16.mxu1 %vm4341_vm3, %v4340_v57 }
 0x419   :  { %3657 = vmatprep.subr.bf16.mxu1 %v4340_v57 }
 0x41c   :  { %3658 = vmatpush3.bf16.msra.mxu1 %v4295_v27 }
 0x41d   :  { %3659 = vmatprep.subr.bf16.mxu1 %v4340_v57 }
 0x420   :  { %3660 = vmatpush3.bf16.msra.mxu1 %v4296_v40 }
 0x421   :  { %3661 = vmatprep.subr.bf16.mxu1 %v4340_v57 }
 0x424   :  { %3662 = vmatpush3.bf16.msra.mxu1 %v4297_v35 }
 0x425   :  { %3667 = vmatprep.subr.bf16.mxu1 %v4340_v57 }
 0x4e2   :  { %v3632_v4 = vpop.f32.mrb[20].mxu1 }
 0x4e3   :  { %v3633_v28 = vpop.f32.mrb[21].mxu1 }
 0x4e4   :  { %v3634_v50 = vadd.f32 %v3633_v28, %v3632_v4  ;;  %v3635_v2 = vpop.f32.mrb[22].mxu1 }
 0x4e5   :  { %v3636_v21 = vpop.f32.mrb[23].mxu1 }
 0x4e6   :  { %v2703_v26 = vadd.f32 %v3634_v50, %v3167_v37 }
 0x4e8   :  { %v2708_v19 = vpack.c.bf16 %v2703_v26, %v2703_v26 }
 0x4ea   :  { %v2760_v15 = vpop.f32.mrb[24].mxu1  ;;  %3664 = vmatmul.mubr.msk.bf16.vlgmr.msra.gmra.mrb[28].mxu1 %vm2790_vm4, %v2708_v19 }
 0x4eb   :  { %v3653_v41 = vpop.f32.mrb[25].mxu1  ;;  %3669 = vmatprep.mubr.msk.bf16.mxu1 %vm4341_vm3, %v4340_v57  ;;  %3668 = vmatpush3.bf16.msra.mxu1 %v2881_v32 }
 0x4ec   :  { %v2763_v12 = vpop.f32.mrb[26].mxu1  ;;  %3673 = vmatprep.subr.bf16.mxu1 %v4340_v57 }
 0x4ed   :  { %v3654_v14 = vpop.f32.mrb[27].mxu1 }
 0x5bd   :  { %v2828_v7 = vpop.f32.mrb[28].mxu1 }
 0x5be   :  { %v2829_v16 = vadd.f32 %v2828_v7, %v2760_v15  ;;  %v3665_v17 = vpop.f32.mrb[29].mxu1 }
 0x5bf   :  { %v2831_v36 = vpop.f32.mrb[30].mxu1 }
 0x5c0   :  { %v2841_v9 = vadd.f32 %v3190_v8, %v2829_v16  ;;  %v3666_v44 = vpop.f32.mrb[31].mxu1  ;;  %v3193_v36 = vld [vmem:[%s5811_s15] ss:$0 sm:$0xff] }
 0x5c2   :  { %v2843_v22 = vmul.f32 0.70710677, %v2841_v9  ;;  %v2842_v53 = vmul.f32 0.5, %v2841_v9 }
 0x5c4   :  { %v2846_v43 = vand.u32 2147483647, %v2843_v22  ;;  %vm2844_vm5 = vcmp.ge.f32.partialorder %v2843_v22, 0.0 }
 0x5c5   :  { %v2845_v20 = vsel %vm2844_vm5, 1.0, %v4342_v33 }
 0x5c6   :  { %v2847_v49 = vmul.f32 0.3275911, %v2846_v43  ;;  %v2859_v59 = vsub.f32 0.0, %v2846_v43 }
 0x5c8   :  { %v2848_v55 = vadd.f32 1.0, %v2847_v49  ;;  %v2860_v1 = vmul.f32 %v2859_v59, %v2846_v43 }
 0x5ca   :  { %4302 = vrcp.f32 %v2848_v55  ;;  %v2861_v58 = vmul.f32 1.442695, %v2860_v1 }
 0x5cc   :  { %4304 = vpow2.f32 %v2861_v58 }
 0x5d4   :  { %v4303_v54 = vpop.eup %4302 }
 0x5d5   :  { %v2850_v5 = vmul.f32 1.0614054, %v4303_v54 }
 0x5d6   :  { %v4305_v29 = vpop.eup %4304 }
 0x5d7   :  { %v2851_v38 = vadd.f32 -1.4531521, %v2850_v5 }
 0x5d9   :  { %v2852_v42 = vmul.f32 %v4303_v54, %v2851_v38 }
 0x5db   :  { %v2853_v60 = vadd.f32 1.4214138, %v2852_v42 }
 0x5dd   :  { %v2854_v25 = vmul.f32 %v4303_v54, %v2853_v60 }
 0x5df   :  { %v2855_v46 = vadd.f32 -0.28449672, %v2854_v25 }
 0x5e1   :  { %v2856_v52 = vmul.f32 %v4303_v54, %v2855_v46 }
 0x5e3   :  { %v2857_v10 = vadd.f32 0.2548296, %v2856_v52 }
 0x5e5   :  { %v2858_v13 = vmul.f32 %v4303_v54, %v2857_v10 }
 0x5e7   :  { %v2863_v23 = vmul.f32 %v4305_v29, %v2858_v13 }
 0x5e9   :  { %v2864_v24 = vsub.f32 1.0, %v2863_v23 }
 0x5eb   :  { %v2865_v47 = vmul.f32 %v2864_v24, %v2845_v20 }
 0x5ed   :  { %v2866_v56 = vadd.f32 1.0, %v2865_v47 }
 0x5ef   :  { %v2867_v45 = vmul.f32 %v2866_v56, %v2842_v53 }
 0x5f1   :  { %v2868_v62 = vpack.c.bf16 %v2867_v45, %v2867_v45 }
 0x5f3   :  { %3670 = vmatmul.mubr.msk.bf16.vlgmr.msra.gmra.mrb[32].mxu1 %vm1182_vm1, %v2868_v62 }
 0x5f4   :  { %3675 = vmatprep.mubr.msk.bf16.mxu1 %vm4341_vm3, %v4340_v57  ;;  %3674 = vmatpush3.bf16.msra.mxu1 %v2962_v31 }
 0x6c6   :  { %v2917_v18 = vpop.f32.mrb[32].mxu1 }
 0x6c7   :  { %v2918_v34 = vadd.f32 %v3191_v11, %v2917_v18  ;;  %v3671_v39 = vpop.f32.mrb[33].mxu1 }
 0x6c8   :  { %v2920_v48 = vpop.f32.mrb[34].mxu1 }
 0x6c9   :  { %v2924_v51 = vmul.f32 0.70710677, %v2918_v34  ;;  %v3672_v61 = vpop.f32.mrb[35].mxu1  ;;  %v2923_v7 = vmul.f32 0.5, %v2918_v34 }
 0x6cb   :  { %v2927_v63 = vand.u32 2147483647, %v2924_v51  ;;  %vm2925_vm6 = vcmp.ge.f32.partialorder %v2924_v51, 0.0 }
 0x6cc   :  { %v2926_v3 = vsel %vm2925_vm6, 1.0, %v4342_v33 }
 0x6cd   :  { %v2928_v0 = vmul.f32 0.3275911, %v2927_v63  ;;  %v2940_v30 = vsub.f32 0.0, %v2927_v63 }
 0x6cf   :  { %v2929_v57 = vadd.f32 1.0, %v2928_v0  ;;  %v2941_v40 = vmul.f32 %v2940_v30, %v2927_v63 }
 0x6d1   :  { %4306 = vrcp.f32 %v2929_v57  ;;  %v2942_v37 = vmul.f32 1.442695, %v2941_v40 }
 0x6d3   :  { %4308 = vpow2.f32 %v2942_v37 }
 0x6db   :  { %v4307_v27 = vpop.eup %4306 }
 0x6dc   :  { %v2931_v35 = vmul.f32 1.0614054, %v4307_v27 }
 0x6dd   :  { %v4309_v41 = vpop.eup %4308 }
 0x6de   :  { %v2932_v4 = vadd.f32 -1.4531521, %v2931_v35 }
 0x6e0   :  { %v2933_v28 = vmul.f32 %v4307_v27, %v2932_v4 }
 0x6e2   :  { %v2934_v50 = vadd.f32 1.4214138, %v2933_v28 }
 0x6e4   :  { %v2935_v2 = vmul.f32 %v4307_v27, %v2934_v50 }
 0x6e6   :  { %v2936_v21 = vadd.f32 -0.28449672, %v2935_v2 }
 0x6e8   :  { %v2937_v26 = vmul.f32 %v4307_v27, %v2936_v21 }
 0x6ea   :  { %v2938_v19 = vadd.f32 0.2548296, %v2937_v26 }
 0x6ec   :  { %v2939_v15 = vmul.f32 %v4307_v27, %v2938_v19 }
 0x6ee   :  { %v2944_v12 = vmul.f32 %v4309_v41, %v2939_v15 }
 0x6f0   :  { %v2945_v14 = vsub.f32 1.0, %v2944_v12 }
 0x6f2   :  { %v2946_v32 = vmul.f32 %v2945_v14, %v2926_v3 }
 0x6f4   :  { %v2947_v8 = vadd.f32 1.0, %v2946_v32 }
 0x6f6   :  { %v2948_v16 = vmul.f32 %v2947_v8, %v2923_v7 }
 0x6f8   :  { %v2949_v17 = vpack.c.bf16 %v2948_v16, %v2948_v16 }
 0x6fa   :  { %3676 = vmatmul.mubr.msk.bf16.vlgmr.msra.gmra.mrb[36].mxu1 %vm1182_vm1, %v2949_v17 }
 0x7cd   :  { %v2998_v9 = vpop.f32.mrb[36].mxu1 }
 0x7ce   :  { %v2999_v44 = vadd.f32 %v3193_v36, %v2998_v9  ;;  %v3677_v22 = vpop.f32.mrb[37].mxu1 }
 0x7cf   :  { %v3001_v43 = vpop.f32.mrb[38].mxu1 }
 0x7d0   :  { %v3195_v49 = vmul.f32 -1.442695, %v2999_v44  ;;  %v3678_v55 = vpop.f32.mrb[39].mxu1 }
 0x7d2   :  { %4310 = vpow2.f32 %v3195_v49 }
 0x7dc   :  { %v4311_v59 = vpop.eup %4310 }
 0x7dd   :  { %v3007_v54 = vadd.f32 1.0, %v4311_v59 }
 0x7df   :  { %4312 = vrcp.f32 %v3007_v54 }
 0x7e9   :  { %v4313_v1 = vpop.eup %4312 }
 0x7ea   :  { %3011 = vst.msk [vmem:[#allocation2] sm:$0x3] %vm3010_vm7, %v4313_v1 }
 0x7eb   :  { %4326 = shalt.err (!%p4323_p4)
}
 0x7ec   :  { %s4327_s4 = scalar_lea.hbm %s5812_s16, 32 }
 0x7ed   :  { %p4328_p5 = scmp.ne.s32.totalorder %s5812_s16, %s4327_s4  ;;  %p4331_p6 = scmp.lt.u32.totalorder %s4327_s4, %s5812_s16 }
 0x7ef   :  { %p4333_p7 = pnand %p4331_p6, %p4328_p5 }
 0x7f1   :  { %4336 = shalt.err (!%p4333_p7)
}
 0x7f2   :  { %3021 = dma.vmem_to_hbm [thread:$0]  %s3019_s18, 32, %s5812_s16, [#allocation3]  }
 0x7f3   :  { %4337 = dma.done.wait [#allocation3], 32  }
 0x7f4   :  { %4338 = vsyncadd [#allocation3], 4294967264 }
 0x7f5   :  { %3025 = vsyncpa [#allocation3], 1 }

</bundles_post_ra>
